<compile_context>
chip_gen: v7x
topology: tpu7x:2x2x1
jax: 0.10.0
libtpu: 0.0.40
codegen_flags: <defaults>
</compile_context>

<pallas_src>
import math

import jax
import jax.numpy as jnp
from jax.experimental import pallas as pl
from jax.experimental.pallas import tpu as pltpu

# ----------------------------- small config ---------------------------------
B = 2            # batch
T = 8            # sequence length
C = 32           # n_embd
H = 4            # n_head
N = C // H       # head_size = 8
# chunk length exactly as in the module
Q = 256 if T % 256 == 0 else (128 if T % 128 == 0 else T)
N_CHUNKS = T // Q
N_LAYER = 4
LAYER_ID = 1
EPS = 1e-5 * 64  # GroupNorm eps from the module


# --------------------------- parameter setup --------------------------------
def make_params():
    r0 = LAYER_ID / (N_LAYER - 1)          # ratio_0_to_1
    r1 = 1.0 - LAYER_ID / N_LAYER          # ratio_1_to_almost0

    ddd = jnp.arange(C, dtype=jnp.float32) / C
    maa_k = 1.0 - ddd ** r1
    maa_v = 1.0 - (ddd ** r1 + 0.3 * r0)
    maa_r = 1.0 - ddd ** (0.5 * r1)
    maa_g = 1.0 - ddd ** (0.5 * r1)

    h = jnp.arange(H, dtype=jnp.float32)
    time_decay = -6.0 + 5.0 * (h / (H - 1)) ** (0.7 + 1.3 * r0)   # (H,)
    time_faaaa = r0 * (1.0 - h / (H - 1))                          # (H,)

    key = jax.random.PRNGKey(0)
    ks = jax.random.split(key, 5)
    scale = 1.0 / math.sqrt(C)
    Wr = jax.random.normal(ks[0], (C, C), jnp.float32) * scale
    Wk = jax.random.normal(ks[1], (C, C), jnp.float32) * scale
    Wv = jax.random.normal(ks[2], (C, C), jnp.float32) * scale
    Wg = jax.random.normal(ks[3], (C, C), jnp.float32) * scale
    Wo = jax.random.normal(ks[4], (C, C), jnp.float32) * scale

    gamma = jnp.ones((C,), jnp.float32)    # GroupNorm default init
    beta = jnp.zeros((C,), jnp.float32)

    return dict(maa_k=maa_k, maa_v=maa_v, maa_r=maa_r, maa_g=maa_g,
                time_decay=time_decay, time_faaaa=time_faaaa,
                Wr=Wr, Wk=Wk, Wv=Wv, Wg=Wg, Wo=Wo, gamma=gamma, beta=beta)


def make_decay_tensors(time_decay, time_faaaa):
    """Replicates the torch construction of w / wk / wb / ws for one chunk of size Q."""
    w = jnp.exp(-jnp.exp(time_decay.astype(jnp.float32)))   # (H,), 0 < w < 1
    u = time_faaaa.astype(jnp.float32)                      # (H,)

    ws = (w ** Q).reshape(H, 1, 1)                          # (H,1,1)
    j = jnp.arange(Q, dtype=jnp.float32)
    wk = (w[:, None] ** (Q - 1 - j)[None, :]).reshape(H, 1, Q)   # (H,1,Q)
    wb = (w[:, None] ** j[None, :]).reshape(H, Q, 1)             # (H,Q,1)

    ii = jnp.arange(Q)[:, None]
    jj = jnp.arange(Q)[None, :]
    expo = (ii - jj - 1).astype(jnp.float32)
    # wmat[h, i, j] = u_h if i == j ; w_h^(i-j-1) if i > j ; 0 if i < j
    wmat = jnp.where(ii > jj, w[:, None, None] ** expo[None, :, :], 0.0)
    wmat = jnp.where((ii == jj)[None, :, :], u[:, None, None], wmat)    # (H,Q,Q)
    return wmat, wk, wb, ws


# -------------------------- the fused Pallas kernel --------------------------
def _rwkv_timemix_kernel(x_ref, mk_ref, mv_ref, mr_ref, mg_ref,
                         wr_ref, wkp_ref, wvp_ref, wgp_ref, wo_ref,
                         wmat_ref, wkd_ref, wbd_ref, ws_ref,
                         gamma_ref, beta_ref,
                         o_ref):
    x = x_ref[0]                                             # (T, C)

    # ---- token shift, in-kernel: xprev[t] = x[t-1], xprev[0] = 0 ----
    xprev = pltpu.roll(x, shift=1, axis=0)                   # XLU sublane rotate
    row = jax.lax.broadcasted_iota(jnp.int32, (T, C), 0)
    xprev = jnp.where(row == 0, 0.0, xprev)
    xx = xprev - x

    # ---- token-shift mixing + the 4 projections (full-width MXU matmuls) ----
    xk = x + xx * mk_ref[...]
    xv = x + xx * mv_ref[...]
    xr = x + xx * mr_ref[...]
    xg = x + xx * mg_ref[...]
    r = jnp.dot(xr, wr_ref[...], preferred_element_type=jnp.float32)    # (T, C)
    k = jnp.dot(xk, wkp_ref[...], preferred_element_type=jnp.float32)   # (T, C)
    v = jnp.dot(xv, wvp_ref[...], preferred_element_type=jnp.float32)   # (T, C)
    gg = jnp.dot(xg, wgp_ref[...], preferred_element_type=jnp.float32)  # (T, C)
    g = gg * jax.nn.sigmoid(gg)                                         # SiLU gate

    # k stays in (time, N) layout: contract on N for scores, on time for the state.
    dn_scores = (((1,), (1,)), ((), ()))     # (Q,N) x (Q,N) -> (Q,Q)   (r @ k^T)
    dn_state = (((0,), (0,)), ((), ()))      # (Q,N) x (Q,N) -> (N,N)   (k^T-scaled @ v)

    out = None
    for h in range(H):
        cs, ce = h * N, (h + 1) * N
        rr_h, kk_h, vv_h = r[:, cs:ce], k[:, cs:ce], v[:, cs:ce]          # (T, N)
        wm = wmat_ref[h]                                                  # (Q, Q)

        # ---- chunked WKV recurrence (N_CHUNKS == 1 at these sizes) ----
        state = None
        y_chunks = []
        for ci in range(N_CHUNKS):
            ts, te = ci * Q, (ci + 1) * Q
            rr, kk, vv = rr_h[ts:te], kk_h[ts:te], vv_h[ts:te]            # (Q, N)
            a = jax.lax.dot_general(rr, kk, dn_scores,
                                    preferred_element_type=jnp.float32) * wm
            y_c = jnp.dot(a, vv, preferred_element_type=jnp.float32)      # (Q, N)
            if state is not None:
                y_c = y_c + jnp.dot(rr, state,
                                    preferred_element_type=jnp.float32) * wbd_ref[h]
            if ci + 1 < N_CHUNKS:
                upd = jax.lax.dot_general(kk * wkd_ref[h], vv, dn_state,
                                          preferred_element_type=jnp.float32)
                state = upd if state is None else ws_ref[h] * state + upd
            y_chunks.append(y_c)
        y_h = y_chunks[0] if N_CHUNKS == 1 else jnp.concatenate(y_chunks, axis=0)

        # ---- GroupNorm (group == head), gate, head-blocked output projection ----
        mean = jnp.mean(y_h, axis=-1, keepdims=True)                      # (T, 1)
        d = y_h - mean
        var = jnp.mean(d * d, axis=-1, keepdims=True)
        yn = d * jax.lax.rsqrt(var + EPS)
        yn = yn * gamma_ref[h] + beta_ref[h]                              # (1,N) bcast
        contrib = jnp.dot(yn * g[:, cs:ce], wo_ref[h],                    # (T,N)@(N,C)
                          preferred_element_type=jnp.float32)
        out = contrib if out is None else out + contrib

    # Dropout(p=0.0) is the identity.  Single lane-dense (T, C) store.
    o_ref[0] = out


def rwkv_timemix_forward(x, p):
    wmat, wkd, wbd, wsd = make_decay_tensors(p["time_decay"], p["time_faaaa"])
    wk_col = wkd.reshape(H, Q, 1)        # per-row scale of k in (Q, N) layout
    ws_flat = wsd.reshape(H)             # per-head scalar decay^Q -> SMEM
    wo_heads = p["Wo"].reshape(H, N, C)  # head-blocked rows of the output projection
    gamma_h = p["gamma"].reshape(H, 1, N)
    beta_h = p["beta"].reshape(H, 1, N)

    bt_spec = pl.BlockSpec((1, T, C), lambda b: (b, 0, 0))
    vec_spec = pl.BlockSpec((1, C), lambda b: (0, 0))
    mat_spec = pl.BlockSpec((C, C), lambda b: (0, 0))
    hvec_spec = pl.BlockSpec((H, 1, N), lambda b: (0, 0, 0))

    return pl.pallas_call(
        _rwkv_timemix_kernel,
        out_shape=jax.ShapeDtypeStruct((B, T, C), jnp.float32),
        grid=(B,),
        in_specs=[
            bt_spec,                                        # x
            vec_spec, vec_spec, vec_spec, vec_spec,         # time_maa_{k,v,r,g}
            mat_spec, mat_spec, mat_spec, mat_spec,         # Wr, Wk, Wv, Wg
            pl.BlockSpec((H, N, C), lambda b: (0, 0, 0)),   # Wo (head-blocked)
            pl.BlockSpec((H, Q, Q), lambda b: (0, 0, 0)),   # decay matrix
            pl.BlockSpec((H, Q, 1), lambda b: (0, 0, 0)),   # wk (column form)
            pl.BlockSpec((H, Q, 1), lambda b: (0, 0, 0)),   # wb
            pl.BlockSpec(memory_space=pltpu.MemorySpace.SMEM),  # ws (H,) scalars
            hvec_spec, hvec_spec,                           # gamma, beta (head-blocked)
        ],
        out_specs=bt_spec,
        compiler_params=pltpu.CompilerParams(
            dimension_semantics=("parallel",),
            vmem_limit_bytes=32 * 1024 * 1024),
    )(x,
      p["maa_k"][None], p["maa_v"][None], p["maa_r"][None], p["maa_g"][None],
      p["Wr"], p["Wk"], p["Wv"], p["Wg"], wo_heads,
      wmat, wk_col, wbd, ws_flat,
      gamma_h, beta_h)


# --------------------------- pure-JAX reference ------------------------------
def reference_forward(x, p):
    xprev = jnp.concatenate([jnp.zeros((B, 1, C), x.dtype), x[:, :-1, :]], axis=1)
    xx = xprev - x
    xk = x + xx * p["maa_k"]
    xv = x + xx * p["maa_v"]
    xr = x + xx * p["maa_r"]
    xg = x + xx * p["maa_g"]
    r = xr @ p["Wr"]
    k = xk @ p["Wk"]
    v = xv @ p["Wv"]
    g = jax.nn.silu(xg @ p["Wg"])
    r = r.reshape(B, T, H, N).transpose(0, 2, 1, 3)
    k = k.reshape(B, T, H, N).transpose(0, 2, 3, 1)
    v = v.reshape(B, T, H, N).transpose(0, 2, 1, 3)
    wmat, wkd, wbd, wsd = make_decay_tensors(p["time_decay"], p["time_faaaa"])
    state = jnp.zeros((B, H, N, N), jnp.float32)
    ys = []
    for i in range(T // Q):
        rr = r[:, :, i * Q:(i + 1) * Q, :]
        kk = k[:, :, :, i * Q:(i + 1) * Q]
        vv = v[:, :, i * Q:(i + 1) * Q, :]
        ys.append((rr @ kk) * wmat[None] @ vv + (rr @ state) * wbd[None])
        state = wsd[None] * state + (kk * wkd[None]) @ vv
    y = jnp.concatenate(ys, axis=2)
    y = y.transpose(0, 2, 1, 3).reshape(B * T, C)
    yh = y.reshape(B * T, H, N)
    mean = yh.mean(-1, keepdims=True)
    var = ((yh - mean) ** 2).mean(-1, keepdims=True)
    yh = (yh - mean) / jnp.sqrt(var + EPS)
    y = yh.reshape(B * T, C) * p["gamma"] + p["beta"]
    y = y.reshape(B, T, C) * g
    return y @ p["Wo"]


if __name__ == "__main__":
    params = make_params()
    x = jax.random.normal(jax.random.PRNGKey(0), (B, T, C), jnp.float32)

    out = rwkv_timemix_forward(x, params)
    out = jax.block_until_ready(out)

    ref = reference_forward(x, params)
    assert out.shape == (B, T, C)
    assert jnp.allclose(out, ref, atol=1e-2, rtol=1e-2)
    print("KERNEL_OK")
</pallas_src>

<mosaic_0001>
module attributes {stable_mosaic.version = 11 : i64} {
  func.func @_rwkv_timemix_kernel(%arg0: i32, %arg1: memref<1x8x32xf32, #tpu.memory_space<vmem>>, %arg2: memref<1x32xf32, #tpu.memory_space<vmem>>, %arg3: memref<1x32xf32, #tpu.memory_space<vmem>>, %arg4: memref<1x32xf32, #tpu.memory_space<vmem>>, %arg5: memref<1x32xf32, #tpu.memory_space<vmem>>, %arg6: memref<32x32xf32, #tpu.memory_space<vmem>>, %arg7: memref<32x32xf32, #tpu.memory_space<vmem>>, %arg8: memref<32x32xf32, #tpu.memory_space<vmem>>, %arg9: memref<32x32xf32, #tpu.memory_space<vmem>>, %arg10: memref<4x8x32xf32, #tpu.memory_space<vmem>>, %arg11: memref<4x8x8xf32, #tpu.memory_space<vmem>>, %arg12: memref<4x8x1xf32, #tpu.memory_space<vmem>>, %arg13: memref<4x8x1xf32, #tpu.memory_space<vmem>>, %arg14: memref<4xf32, #tpu.memory_space<smem>>, %arg15: memref<4x1x8xf32, #tpu.memory_space<vmem>>, %arg16: memref<4x1x8xf32, #tpu.memory_space<vmem>>, %arg17: memref<1x8x32xf32, #tpu.memory_space<vmem>>) attributes {dimension_semantics = [#tpu.dimension_semantics<parallel>], iteration_bounds = array<i64: 2>, scalar_prefetch = 0 : i64, scratch_operands = 0 : i64, tpu.core_type = #tpu.core_type<tc>, window_params = [{transform_indices = @transform_0, window_bounds = array<i64: 1, 8, 32>}, {pipeline_mode = #tpu.pipeline_mode<synchronous>, transform_indices = @transform_1, window_bounds = array<i64: 1, 32>}, {pipeline_mode = #tpu.pipeline_mode<synchronous>, transform_indices = @transform_2, window_bounds = array<i64: 1, 32>}, {pipeline_mode = #tpu.pipeline_mode<synchronous>, transform_indices = @transform_3, window_bounds = array<i64: 1, 32>}, {pipeline_mode = #tpu.pipeline_mode<synchronous>, transform_indices = @transform_4, window_bounds = array<i64: 1, 32>}, {pipeline_mode = #tpu.pipeline_mode<synchronous>, transform_indices = @transform_5, window_bounds = array<i64: 32, 32>}, {pipeline_mode = #tpu.pipeline_mode<synchronous>, transform_indices = @transform_6, window_bounds = array<i64: 32, 32>}, {pipeline_mode = #tpu.pipeline_mode<synchronous>, transform_indices = @transform_7, window_bounds = array<i64: 32, 32>}, {pipeline_mode = #tpu.pipeline_mode<synchronous>, transform_indices = @transform_8, window_bounds = array<i64: 32, 32>}, {pipeline_mode = #tpu.pipeline_mode<synchronous>, transform_indices = @transform_9, window_bounds = array<i64: 4, 8, 32>}, {pipeline_mode = #tpu.pipeline_mode<synchronous>, transform_indices = @transform_10, window_bounds = array<i64: 4, 8, 8>}, {pipeline_mode = #tpu.pipeline_mode<synchronous>, transform_indices = @transform_11, window_bounds = array<i64: 4, 8, 1>}, {pipeline_mode = #tpu.pipeline_mode<synchronous>, transform_indices = @transform_12, window_bounds = array<i64: 4, 8, 1>}, {transform_indices = @transform_13, window_bounds = array<i64: 4>}, {pipeline_mode = #tpu.pipeline_mode<synchronous>, transform_indices = @transform_14, window_bounds = array<i64: 4, 1, 8>}, {pipeline_mode = #tpu.pipeline_mode<synchronous>, transform_indices = @transform_15, window_bounds = array<i64: 4, 1, 8>}, {transform_indices = @transform_16, window_bounds = array<i64: 1, 8, 32>}]} {
    %c0 = arith.constant 0 : index
    %c0_0 = arith.constant 0 : index
    %c0_1 = arith.constant 0 : index
    %0 = vector.load %arg1[%c0, %c0_0, %c0_1] : memref<1x8x32xf32, #tpu.memory_space<vmem>>, vector<1x8x32xf32>
    %1 = vector.shape_cast %0 : vector<1x8x32xf32> to vector<8x32xf32>
    %c1_i32 = arith.constant 1 : i32
    %2 = tpu.dynamic_rotate %1 by %c1_i32 dim 0 : vector<8x32xf32>, i32 -> vector<8x32xf32>
    %3 = tpu.iota {dimensions = array<i32: 0>} : vector<8x32xi32>
    %c0_i32 = arith.constant 0 : i32
    %4 = vector.broadcast %c0_i32 : i32 to vector<8x32xi32>
    %5 = arith.cmpi eq, %3, %4 : vector<8x32xi32>
    %cst = arith.constant 0.000000e+00 : f32
    %6 = vector.broadcast %cst : f32 to vector<8x32xf32>
    %7 = arith.select %5, %6, %2 : vector<8x32xi1>, vector<8x32xf32>
    %8 = arith.subf %7, %1 : vector<8x32xf32>
    %c0_2 = arith.constant 0 : index
    %c0_3 = arith.constant 0 : index
    %9 = vector.load %arg2[%c0_2, %c0_3] : memref<1x32xf32, #tpu.memory_space<vmem>>, vector<1x32xf32>
    %10 = vector.broadcast %9 : vector<1x32xf32> to vector<8x32xf32>
    %11 = arith.mulf %8, %10 : vector<8x32xf32>
    %12 = arith.addf %1, %11 : vector<8x32xf32>
    %c0_4 = arith.constant 0 : index
    %c0_5 = arith.constant 0 : index
    %13 = vector.load %arg3[%c0_4, %c0_5] : memref<1x32xf32, #tpu.memory_space<vmem>>, vector<1x32xf32>
    %14 = vector.broadcast %13 : vector<1x32xf32> to vector<8x32xf32>
    %15 = arith.mulf %8, %14 : vector<8x32xf32>
    %16 = arith.addf %1, %15 : vector<8x32xf32>
    %c0_6 = arith.constant 0 : index
    %c0_7 = arith.constant 0 : index
    %17 = vector.load %arg4[%c0_6, %c0_7] : memref<1x32xf32, #tpu.memory_space<vmem>>, vector<1x32xf32>
    %18 = vector.broadcast %17 : vector<1x32xf32> to vector<8x32xf32>
    %19 = arith.mulf %8, %18 : vector<8x32xf32>
    %20 = arith.addf %1, %19 : vector<8x32xf32>
    %c0_8 = arith.constant 0 : index
    %c0_9 = arith.constant 0 : index
    %21 = vector.load %arg5[%c0_8, %c0_9] : memref<1x32xf32, #tpu.memory_space<vmem>>, vector<1x32xf32>
    %22 = vector.broadcast %21 : vector<1x32xf32> to vector<8x32xf32>
    %23 = arith.mulf %8, %22 : vector<8x32xf32>
    %24 = arith.addf %1, %23 : vector<8x32xf32>
    %c0_10 = arith.constant 0 : index
    %c0_11 = arith.constant 0 : index
    %25 = vector.load %arg6[%c0_10, %c0_11] : memref<32x32xf32, #tpu.memory_space<vmem>>, vector<32x32xf32>
    %cst_12 = arith.constant dense<0.000000e+00> : vector<8x32xf32>
    %26 = tpu.matmul %20, %25, %cst_12 {dimension_numbers = #tpu.dot_dimension_numbers<[1], [0], [0], [1], [0, 0, 1, 1], [], []>} : vector<8x32xf32>, vector<32x32xf32>, vector<8x32xf32> -> vector<8x32xf32>
    %c0_13 = arith.constant 0 : index
    %c0_14 = arith.constant 0 : index
    %27 = vector.load %arg7[%c0_13, %c0_14] : memref<32x32xf32, #tpu.memory_space<vmem>>, vector<32x32xf32>
    %cst_15 = arith.constant dense<0.000000e+00> : vector<8x32xf32>
    %28 = tpu.matmul %12, %27, %cst_15 {dimension_numbers = #tpu.dot_dimension_numbers<[1], [0], [0], [1], [0, 0, 1, 1], [], []>} : vector<8x32xf32>, vector<32x32xf32>, vector<8x32xf32> -> vector<8x32xf32>
    %c0_16 = arith.constant 0 : index
    %c0_17 = arith.constant 0 : index
    %29 = vector.load %arg8[%c0_16, %c0_17] : memref<32x32xf32, #tpu.memory_space<vmem>>, vector<32x32xf32>
    %cst_18 = arith.constant dense<0.000000e+00> : vector<8x32xf32>
    %30 = tpu.matmul %16, %29, %cst_18 {dimension_numbers = #tpu.dot_dimension_numbers<[1], [0], [0], [1], [0, 0, 1, 1], [], []>} : vector<8x32xf32>, vector<32x32xf32>, vector<8x32xf32> -> vector<8x32xf32>
    %c0_19 = arith.constant 0 : index
    %c0_20 = arith.constant 0 : index
    %31 = vector.load %arg9[%c0_19, %c0_20] : memref<32x32xf32, #tpu.memory_space<vmem>>, vector<32x32xf32>
    %cst_21 = arith.constant dense<0.000000e+00> : vector<8x32xf32>
    %32 = tpu.matmul %24, %31, %cst_21 {dimension_numbers = #tpu.dot_dimension_numbers<[1], [0], [0], [1], [0, 0, 1, 1], [], []>} : vector<8x32xf32>, vector<32x32xf32>, vector<8x32xf32> -> vector<8x32xf32>
    %33 = arith.negf %32 : vector<8x32xf32>
    %34 = math.exp %33 : vector<8x32xf32>
    %cst_22 = arith.constant 1.000000e+00 : f32
    %35 = vector.broadcast %cst_22 : f32 to vector<8x32xf32>
    %36 = arith.addf %35, %34 : vector<8x32xf32>
    %37 = arith.divf %35, %36 : vector<8x32xf32>
    %38 = arith.mulf %32, %37 : vector<8x32xf32>
    %39 = vector.extract_strided_slice %26 {offsets = [0, 0], sizes = [8, 8], strides = [1, 1]} : vector<8x32xf32> to vector<8x8xf32>
    %40 = vector.extract_strided_slice %28 {offsets = [0, 0], sizes = [8, 8], strides = [1, 1]} : vector<8x32xf32> to vector<8x8xf32>
    %41 = vector.extract_strided_slice %30 {offsets = [0, 0], sizes = [8, 8], strides = [1, 1]} : vector<8x32xf32> to vector<8x8xf32>
    %c0_23 = arith.constant 0 : index
    %c0_24 = arith.constant 0 : index
    %c0_25 = arith.constant 0 : index
    %42 = vector.load %arg11[%c0_23, %c0_24, %c0_25] : memref<4x8x8xf32, #tpu.memory_space<vmem>>, vector<1x8x8xf32>
    %43 = vector.shape_cast %42 : vector<1x8x8xf32> to vector<8x8xf32>
    %cst_26 = arith.constant dense<0.000000e+00> : vector<8x8xf32>
    %44 = tpu.matmul %39, %40, %cst_26 {dimension_numbers = #tpu.dot_dimension_numbers<[1], [1], [0], [0], [0, 0, 1, 0], [], []>} : vector<8x8xf32>, vector<8x8xf32>, vector<8x8xf32> -> vector<8x8xf32>
    %45 = arith.mulf %44, %43 : vector<8x8xf32>
    %cst_27 = arith.constant dense<0.000000e+00> : vector<8x8xf32>
    %46 = tpu.matmul %45, %41, %cst_27 {dimension_numbers = #tpu.dot_dimension_numbers<[1], [0], [0], [1], [0, 0, 1, 1], [], []>} : vector<8x8xf32>, vector<8x8xf32>, vector<8x8xf32> -> vector<8x8xf32>
    %cst_28 = arith.constant dense<0.000000e+00> : vector<8xf32>
    %47 = vector.multi_reduction <add>, %46, %cst_28 [1] : vector<8x8xf32> to vector<8xf32>
    %48 = vector.shape_cast %47 : vector<8xf32> to vector<8x1xf32>
    %cst_29 = arith.constant 8.000000e+00 : f32
    %49 = vector.broadcast %cst_29 : f32 to vector<8x1xf32>
    %50 = arith.divf %48, %49 : vector<8x1xf32>
    %51 = vector.broadcast %50 : vector<8x1xf32> to vector<8x8xf32>
    %52 = arith.subf %46, %51 : vector<8x8xf32>
    %53 = arith.mulf %52, %52 : vector<8x8xf32>
    %cst_30 = arith.constant dense<0.000000e+00> : vector<8xf32>
    %54 = vector.multi_reduction <add>, %53, %cst_30 [1] : vector<8x8xf32> to vector<8xf32>
    %55 = vector.shape_cast %54 : vector<8xf32> to vector<8x1xf32>
    %cst_31 = arith.constant 8.000000e+00 : f32
    %56 = vector.broadcast %cst_31 : f32 to vector<8x1xf32>
    %57 = arith.divf %55, %56 : vector<8x1xf32>
    %cst_32 = arith.constant 6.400000e-04 : f32
    %58 = vector.broadcast %cst_32 : f32 to vector<8x1xf32>
    %59 = arith.addf %57, %58 : vector<8x1xf32>
    %60 = math.rsqrt %59 : vector<8x1xf32>
    %61 = vector.broadcast %60 : vector<8x1xf32> to vector<8x8xf32>
    %62 = arith.mulf %52, %61 : vector<8x8xf32>
    %c0_33 = arith.constant 0 : index
    %c0_34 = arith.constant 0 : index
    %c0_35 = arith.constant 0 : index
    %63 = vector.load %arg15[%c0_33, %c0_34, %c0_35] : memref<4x1x8xf32, #tpu.memory_space<vmem>>, vector<1x1x8xf32>
    %64 = vector.shape_cast %63 : vector<1x1x8xf32> to vector<1x8xf32>
    %65 = vector.broadcast %64 : vector<1x8xf32> to vector<8x8xf32>
    %66 = arith.mulf %62, %65 : vector<8x8xf32>
    %c0_36 = arith.constant 0 : index
    %c0_37 = arith.constant 0 : index
    %c0_38 = arith.constant 0 : index
    %67 = vector.load %arg16[%c0_36, %c0_37, %c0_38] : memref<4x1x8xf32, #tpu.memory_space<vmem>>, vector<1x1x8xf32>
    %68 = vector.shape_cast %67 : vector<1x1x8xf32> to vector<1x8xf32>
    %69 = vector.broadcast %68 : vector<1x8xf32> to vector<8x8xf32>
    %70 = arith.addf %66, %69 : vector<8x8xf32>
    %71 = vector.extract_strided_slice %38 {offsets = [0, 0], sizes = [8, 8], strides = [1, 1]} : vector<8x32xf32> to vector<8x8xf32>
    %72 = arith.mulf %70, %71 : vector<8x8xf32>
    %c0_39 = arith.constant 0 : index
    %c0_40 = arith.constant 0 : index
    %c0_41 = arith.constant 0 : index
    %73 = vector.load %arg10[%c0_39, %c0_40, %c0_41] : memref<4x8x32xf32, #tpu.memory_space<vmem>>, vector<1x8x32xf32>
    %74 = vector.shape_cast %73 : vector<1x8x32xf32> to vector<8x32xf32>
    %cst_42 = arith.constant dense<0.000000e+00> : vector<8x32xf32>
    %75 = tpu.matmul %72, %74, %cst_42 {dimension_numbers = #tpu.dot_dimension_numbers<[1], [0], [0], [1], [0, 0, 1, 1], [], []>} : vector<8x8xf32>, vector<8x32xf32>, vector<8x32xf32> -> vector<8x32xf32>
    %76 = vector.extract_strided_slice %26 {offsets = [0, 8], sizes = [8, 8], strides = [1, 1]} : vector<8x32xf32> to vector<8x8xf32>
    %77 = vector.extract_strided_slice %28 {offsets = [0, 8], sizes = [8, 8], strides = [1, 1]} : vector<8x32xf32> to vector<8x8xf32>
    %78 = vector.extract_strided_slice %30 {offsets = [0, 8], sizes = [8, 8], strides = [1, 1]} : vector<8x32xf32> to vector<8x8xf32>
    %c1 = arith.constant 1 : index
    %c0_43 = arith.constant 0 : index
    %c0_44 = arith.constant 0 : index
    %79 = vector.load %arg11[%c1, %c0_43, %c0_44] : memref<4x8x8xf32, #tpu.memory_space<vmem>>, vector<1x8x8xf32>
    %80 = vector.shape_cast %79 : vector<1x8x8xf32> to vector<8x8xf32>
    %cst_45 = arith.constant dense<0.000000e+00> : vector<8x8xf32>
    %81 = tpu.matmul %76, %77, %cst_45 {dimension_numbers = #tpu.dot_dimension_numbers<[1], [1], [0], [0], [0, 0, 1, 0], [], []>} : vector<8x8xf32>, vector<8x8xf32>, vector<8x8xf32> -> vector<8x8xf32>
    %82 = arith.mulf %81, %80 : vector<8x8xf32>
    %cst_46 = arith.constant dense<0.000000e+00> : vector<8x8xf32>
    %83 = tpu.matmul %82, %78, %cst_46 {dimension_numbers = #tpu.dot_dimension_numbers<[1], [0], [0], [1], [0, 0, 1, 1], [], []>} : vector<8x8xf32>, vector<8x8xf32>, vector<8x8xf32> -> vector<8x8xf32>
    %cst_47 = arith.constant dense<0.000000e+00> : vector<8xf32>
    %84 = vector.multi_reduction <add>, %83, %cst_47 [1] : vector<8x8xf32> to vector<8xf32>
    %85 = vector.shape_cast %84 : vector<8xf32> to vector<8x1xf32>
    %cst_48 = arith.constant 8.000000e+00 : f32
    %86 = vector.broadcast %cst_48 : f32 to vector<8x1xf32>
    %87 = arith.divf %85, %86 : vector<8x1xf32>
    %88 = vector.broadcast %87 : vector<8x1xf32> to vector<8x8xf32>
    %89 = arith.subf %83, %88 : vector<8x8xf32>
    %90 = arith.mulf %89, %89 : vector<8x8xf32>
    %cst_49 = arith.constant dense<0.000000e+00> : vector<8xf32>
    %91 = vector.multi_reduction <add>, %90, %cst_49 [1] : vector<8x8xf32> to vector<8xf32>
    %92 = vector.shape_cast %91 : vector<8xf32> to vector<8x1xf32>
    %cst_50 = arith.constant 8.000000e+00 : f32
    %93 = vector.broadcast %cst_50 : f32 to vector<8x1xf32>
    %94 = arith.divf %92, %93 : vector<8x1xf32>
    %cst_51 = arith.constant 6.400000e-04 : f32
    %95 = vector.broadcast %cst_51 : f32 to vector<8x1xf32>
    %96 = arith.addf %94, %95 : vector<8x1xf32>
    %97 = math.rsqrt %96 : vector<8x1xf32>
    %98 = vector.broadcast %97 : vector<8x1xf32> to vector<8x8xf32>
    %99 = arith.mulf %89, %98 : vector<8x8xf32>
    %c1_52 = arith.constant 1 : index
    %c0_53 = arith.constant 0 : index
    %c0_54 = arith.constant 0 : index
    %100 = vector.load %arg15[%c1_52, %c0_53, %c0_54] : memref<4x1x8xf32, #tpu.memory_space<vmem>>, vector<1x1x8xf32>
    %101 = vector.shape_cast %100 : vector<1x1x8xf32> to vector<1x8xf32>
    %102 = vector.broadcast %101 : vector<1x8xf32> to vector<8x8xf32>
    %103 = arith.mulf %99, %102 : vector<8x8xf32>
    %c1_55 = arith.constant 1 : index
    %c0_56 = arith.constant 0 : index
    %c0_57 = arith.constant 0 : index
    %104 = vector.load %arg16[%c1_55, %c0_56, %c0_57] : memref<4x1x8xf32, #tpu.memory_space<vmem>>, vector<1x1x8xf32>
    %105 = vector.shape_cast %104 : vector<1x1x8xf32> to vector<1x8xf32>
    %106 = vector.broadcast %105 : vector<1x8xf32> to vector<8x8xf32>
    %107 = arith.addf %103, %106 : vector<8x8xf32>
    %108 = vector.extract_strided_slice %38 {offsets = [0, 8], sizes = [8, 8], strides = [1, 1]} : vector<8x32xf32> to vector<8x8xf32>
    %109 = arith.mulf %107, %108 : vector<8x8xf32>
    %c1_58 = arith.constant 1 : index
    %c0_59 = arith.constant 0 : index
    %c0_60 = arith.constant 0 : index
    %110 = vector.load %arg10[%c1_58, %c0_59, %c0_60] : memref<4x8x32xf32, #tpu.memory_space<vmem>>, vector<1x8x32xf32>
    %111 = vector.shape_cast %110 : vector<1x8x32xf32> to vector<8x32xf32>
    %cst_61 = arith.constant dense<0.000000e+00> : vector<8x32xf32>
    %112 = tpu.matmul %109, %111, %cst_61 {dimension_numbers = #tpu.dot_dimension_numbers<[1], [0], [0], [1], [0, 0, 1, 1], [], []>} : vector<8x8xf32>, vector<8x32xf32>, vector<8x32xf32> -> vector<8x32xf32>
    %113 = arith.addf %75, %112 : vector<8x32xf32>
    %114 = vector.extract_strided_slice %26 {offsets = [0, 16], sizes = [8, 8], strides = [1, 1]} : vector<8x32xf32> to vector<8x8xf32>
    %115 = vector.extract_strided_slice %28 {offsets = [0, 16], sizes = [8, 8], strides = [1, 1]} : vector<8x32xf32> to vector<8x8xf32>
    %116 = vector.extract_strided_slice %30 {offsets = [0, 16], sizes = [8, 8], strides = [1, 1]} : vector<8x32xf32> to vector<8x8xf32>
    %c2 = arith.constant 2 : index
    %c0_62 = arith.constant 0 : index
    %c0_63 = arith.constant 0 : index
    %117 = vector.load %arg11[%c2, %c0_62, %c0_63] : memref<4x8x8xf32, #tpu.memory_space<vmem>>, vector<1x8x8xf32>
    %118 = vector.shape_cast %117 : vector<1x8x8xf32> to vector<8x8xf32>
    %cst_64 = arith.constant dense<0.000000e+00> : vector<8x8xf32>
    %119 = tpu.matmul %114, %115, %cst_64 {dimension_numbers = #tpu.dot_dimension_numbers<[1], [1], [0], [0], [0, 0, 1, 0], [], []>} : vector<8x8xf32>, vector<8x8xf32>, vector<8x8xf32> -> vector<8x8xf32>
    %120 = arith.mulf %119, %118 : vector<8x8xf32>
    %cst_65 = arith.constant dense<0.000000e+00> : vector<8x8xf32>
    %121 = tpu.matmul %120, %116, %cst_65 {dimension_numbers = #tpu.dot_dimension_numbers<[1], [0], [0], [1], [0, 0, 1, 1], [], []>} : vector<8x8xf32>, vector<8x8xf32>, vector<8x8xf32> -> vector<8x8xf32>
    %cst_66 = arith.constant dense<0.000000e+00> : vector<8xf32>
    %122 = vector.multi_reduction <add>, %121, %cst_66 [1] : vector<8x8xf32> to vector<8xf32>
    %123 = vector.shape_cast %122 : vector<8xf32> to vector<8x1xf32>
    %cst_67 = arith.constant 8.000000e+00 : f32
    %124 = vector.broadcast %cst_67 : f32 to vector<8x1xf32>
    %125 = arith.divf %123, %124 : vector<8x1xf32>
    %126 = vector.broadcast %125 : vector<8x1xf32> to vector<8x8xf32>
    %127 = arith.subf %121, %126 : vector<8x8xf32>
    %128 = arith.mulf %127, %127 : vector<8x8xf32>
    %cst_68 = arith.constant dense<0.000000e+00> : vector<8xf32>
    %129 = vector.multi_reduction <add>, %128, %cst_68 [1] : vector<8x8xf32> to vector<8xf32>
    %130 = vector.shape_cast %129 : vector<8xf32> to vector<8x1xf32>
    %cst_69 = arith.constant 8.000000e+00 : f32
    %131 = vector.broadcast %cst_69 : f32 to vector<8x1xf32>
    %132 = arith.divf %130, %131 : vector<8x1xf32>
    %cst_70 = arith.constant 6.400000e-04 : f32
    %133 = vector.broadcast %cst_70 : f32 to vector<8x1xf32>
    %134 = arith.addf %132, %133 : vector<8x1xf32>
    %135 = math.rsqrt %134 : vector<8x1xf32>
    %136 = vector.broadcast %135 : vector<8x1xf32> to vector<8x8xf32>
    %137 = arith.mulf %127, %136 : vector<8x8xf32>
    %c2_71 = arith.constant 2 : index
    %c0_72 = arith.constant 0 : index
    %c0_73 = arith.constant 0 : index
    %138 = vector.load %arg15[%c2_71, %c0_72, %c0_73] : memref<4x1x8xf32, #tpu.memory_space<vmem>>, vector<1x1x8xf32>
    %139 = vector.shape_cast %138 : vector<1x1x8xf32> to vector<1x8xf32>
    %140 = vector.broadcast %139 : vector<1x8xf32> to vector<8x8xf32>
    %141 = arith.mulf %137, %140 : vector<8x8xf32>
    %c2_74 = arith.constant 2 : index
    %c0_75 = arith.constant 0 : index
    %c0_76 = arith.constant 0 : index
    %142 = vector.load %arg16[%c2_74, %c0_75, %c0_76] : memref<4x1x8xf32, #tpu.memory_space<vmem>>, vector<1x1x8xf32>
    %143 = vector.shape_cast %142 : vector<1x1x8xf32> to vector<1x8xf32>
    %144 = vector.broadcast %143 : vector<1x8xf32> to vector<8x8xf32>
    %145 = arith.addf %141, %144 : vector<8x8xf32>
    %146 = vector.extract_strided_slice %38 {offsets = [0, 16], sizes = [8, 8], strides = [1, 1]} : vector<8x32xf32> to vector<8x8xf32>
    %147 = arith.mulf %145, %146 : vector<8x8xf32>
    %c2_77 = arith.constant 2 : index
    %c0_78 = arith.constant 0 : index
    %c0_79 = arith.constant 0 : index
    %148 = vector.load %arg10[%c2_77, %c0_78, %c0_79] : memref<4x8x32xf32, #tpu.memory_space<vmem>>, vector<1x8x32xf32>
    %149 = vector.shape_cast %148 : vector<1x8x32xf32> to vector<8x32xf32>
    %cst_80 = arith.constant dense<0.000000e+00> : vector<8x32xf32>
    %150 = tpu.matmul %147, %149, %cst_80 {dimension_numbers = #tpu.dot_dimension_numbers<[1], [0], [0], [1], [0, 0, 1, 1], [], []>} : vector<8x8xf32>, vector<8x32xf32>, vector<8x32xf32> -> vector<8x32xf32>
    %151 = arith.addf %113, %150 : vector<8x32xf32>
    %152 = vector.extract_strided_slice %26 {offsets = [0, 24], sizes = [8, 8], strides = [1, 1]} : vector<8x32xf32> to vector<8x8xf32>
    %153 = vector.extract_strided_slice %28 {offsets = [0, 24], sizes = [8, 8], strides = [1, 1]} : vector<8x32xf32> to vector<8x8xf32>
    %154 = vector.extract_strided_slice %30 {offsets = [0, 24], sizes = [8, 8], strides = [1, 1]} : vector<8x32xf32> to vector<8x8xf32>
    %c3 = arith.constant 3 : index
    %c0_81 = arith.constant 0 : index
    %c0_82 = arith.constant 0 : index
    %155 = vector.load %arg11[%c3, %c0_81, %c0_82] : memref<4x8x8xf32, #tpu.memory_space<vmem>>, vector<1x8x8xf32>
    %156 = vector.shape_cast %155 : vector<1x8x8xf32> to vector<8x8xf32>
    %cst_83 = arith.constant dense<0.000000e+00> : vector<8x8xf32>
    %157 = tpu.matmul %152, %153, %cst_83 {dimension_numbers = #tpu.dot_dimension_numbers<[1], [1], [0], [0], [0, 0, 1, 0], [], []>} : vector<8x8xf32>, vector<8x8xf32>, vector<8x8xf32> -> vector<8x8xf32>
    %158 = arith.mulf %157, %156 : vector<8x8xf32>
    %cst_84 = arith.constant dense<0.000000e+00> : vector<8x8xf32>
    %159 = tpu.matmul %158, %154, %cst_84 {dimension_numbers = #tpu.dot_dimension_numbers<[1], [0], [0], [1], [0, 0, 1, 1], [], []>} : vector<8x8xf32>, vector<8x8xf32>, vector<8x8xf32> -> vector<8x8xf32>
    %cst_85 = arith.constant dense<0.000000e+00> : vector<8xf32>
    %160 = vector.multi_reduction <add>, %159, %cst_85 [1] : vector<8x8xf32> to vector<8xf32>
    %161 = vector.shape_cast %160 : vector<8xf32> to vector<8x1xf32>
    %cst_86 = arith.constant 8.000000e+00 : f32
    %162 = vector.broadcast %cst_86 : f32 to vector<8x1xf32>
    %163 = arith.divf %161, %162 : vector<8x1xf32>
    %164 = vector.broadcast %163 : vector<8x1xf32> to vector<8x8xf32>
    %165 = arith.subf %159, %164 : vector<8x8xf32>
    %166 = arith.mulf %165, %165 : vector<8x8xf32>
    %cst_87 = arith.constant dense<0.000000e+00> : vector<8xf32>
    %167 = vector.multi_reduction <add>, %166, %cst_87 [1] : vector<8x8xf32> to vector<8xf32>
    %168 = vector.shape_cast %167 : vector<8xf32> to vector<8x1xf32>
    %cst_88 = arith.constant 8.000000e+00 : f32
    %169 = vector.broadcast %cst_88 : f32 to vector<8x1xf32>
    %170 = arith.divf %168, %169 : vector<8x1xf32>
    %cst_89 = arith.constant 6.400000e-04 : f32
    %171 = vector.broadcast %cst_89 : f32 to vector<8x1xf32>
    %172 = arith.addf %170, %171 : vector<8x1xf32>
    %173 = math.rsqrt %172 : vector<8x1xf32>
    %174 = vector.broadcast %173 : vector<8x1xf32> to vector<8x8xf32>
    %175 = arith.mulf %165, %174 : vector<8x8xf32>
    %c3_90 = arith.constant 3 : index
    %c0_91 = arith.constant 0 : index
    %c0_92 = arith.constant 0 : index
    %176 = vector.load %arg15[%c3_90, %c0_91, %c0_92] : memref<4x1x8xf32, #tpu.memory_space<vmem>>, vector<1x1x8xf32>
    %177 = vector.shape_cast %176 : vector<1x1x8xf32> to vector<1x8xf32>
    %178 = vector.broadcast %177 : vector<1x8xf32> to vector<8x8xf32>
    %179 = arith.mulf %175, %178 : vector<8x8xf32>
    %c3_93 = arith.constant 3 : index
    %c0_94 = arith.constant 0 : index
    %c0_95 = arith.constant 0 : index
    %180 = vector.load %arg16[%c3_93, %c0_94, %c0_95] : memref<4x1x8xf32, #tpu.memory_space<vmem>>, vector<1x1x8xf32>
    %181 = vector.shape_cast %180 : vector<1x1x8xf32> to vector<1x8xf32>
    %182 = vector.broadcast %181 : vector<1x8xf32> to vector<8x8xf32>
    %183 = arith.addf %179, %182 : vector<8x8xf32>
    %184 = vector.extract_strided_slice %38 {offsets = [0, 24], sizes = [8, 8], strides = [1, 1]} : vector<8x32xf32> to vector<8x8xf32>
    %185 = arith.mulf %183, %184 : vector<8x8xf32>
    %c3_96 = arith.constant 3 : index
    %c0_97 = arith.constant 0 : index
    %c0_98 = arith.constant 0 : index
    %186 = vector.load %arg10[%c3_96, %c0_97, %c0_98] : memref<4x8x32xf32, #tpu.memory_space<vmem>>, vector<1x8x32xf32>
    %187 = vector.shape_cast %186 : vector<1x8x32xf32> to vector<8x32xf32>
    %cst_99 = arith.constant dense<0.000000e+00> : vector<8x32xf32>
    %188 = tpu.matmul %185, %187, %cst_99 {dimension_numbers = #tpu.dot_dimension_numbers<[1], [0], [0], [1], [0, 0, 1, 1], [], []>} : vector<8x8xf32>, vector<8x32xf32>, vector<8x32xf32> -> vector<8x32xf32>
    %189 = arith.addf %151, %188 : vector<8x32xf32>
    %c0_100 = arith.constant 0 : index
    %c0_101 = arith.constant 0 : index
    %c0_102 = arith.constant 0 : index
    %190 = vector.load %arg17[%c0_100, %c0_101, %c0_102] : memref<1x8x32xf32, #tpu.memory_space<vmem>>, vector<1x8x32xf32>
    %191 = vector.shape_cast %190 : vector<1x8x32xf32> to vector<8x32xf32>
    %192 = vector.shape_cast %189 : vector<8x32xf32> to vector<1x8x32xf32>
    tpu.vector_store %arg17[%c0_100, %c0_101, %c0_102], %192 {strides = array<i32>} : memref<1x8x32xf32, #tpu.memory_space<vmem>>, vector<1x8x32xf32>,
    return
  }
  func.func @transform_0(%arg0: i32) -> (i32, i32, i32) {
    %c0_i32 = arith.constant 0 : i32
    %c0_i32_0 = arith.constant 0 : i32
    %c0_i32_1 = arith.constant 0 : i32
    return %arg0, %c0_i32, %c0_i32_0 : i32, i32, i32
  }
  func.func @transform_1(%arg0: i32) -> (i32, i32) {
    %c0_i32 = arith.constant 0 : i32
    %c0_i32_0 = arith.constant 0 : i32
    %c0_i32_1 = arith.constant 0 : i32
    return %c0_i32, %c0_i32_0 : i32, i32
  }
  func.func @transform_2(%arg0: i32) -> (i32, i32) {
    %c0_i32 = arith.constant 0 : i32
    %c0_i32_0 = arith.constant 0 : i32
    %c0_i32_1 = arith.constant 0 : i32
    return %c0_i32, %c0_i32_0 : i32, i32
  }
  func.func @transform_3(%arg0: i32) -> (i32, i32) {
    %c0_i32 = arith.constant 0 : i32
    %c0_i32_0 = arith.constant 0 : i32
    %c0_i32_1 = arith.constant 0 : i32
    return %c0_i32, %c0_i32_0 : i32, i32
  }
  func.func @transform_4(%arg0: i32) -> (i32, i32) {
    %c0_i32 = arith.constant 0 : i32
    %c0_i32_0 = arith.constant 0 : i32
    %c0_i32_1 = arith.constant 0 : i32
    return %c0_i32, %c0_i32_0 : i32, i32
  }
  func.func @transform_5(%arg0: i32) -> (i32, i32) {
    %c0_i32 = arith.constant 0 : i32
    %c0_i32_0 = arith.constant 0 : i32
    %c0_i32_1 = arith.constant 0 : i32
    return %c0_i32, %c0_i32_0 : i32, i32
  }
  func.func @transform_6(%arg0: i32) -> (i32, i32) {
    %c0_i32 = arith.constant 0 : i32
    %c0_i32_0 = arith.constant 0 : i32
    %c0_i32_1 = arith.constant 0 : i32
    return %c0_i32, %c0_i32_0 : i32, i32
  }
  func.func @transform_7(%arg0: i32) -> (i32, i32) {
    %c0_i32 = arith.constant 0 : i32
    %c0_i32_0 = arith.constant 0 : i32
    %c0_i32_1 = arith.constant 0 : i32
    return %c0_i32, %c0_i32_0 : i32, i32
  }
  func.func @transform_8(%arg0: i32) -> (i32, i32) {
    %c0_i32 = arith.constant 0 : i32
    %c0_i32_0 = arith.constant 0 : i32
    %c0_i32_1 = arith.constant 0 : i32
    return %c0_i32, %c0_i32_0 : i32, i32
  }
  func.func @transform_9(%arg0: i32) -> (i32, i32, i32) {
    %c0_i32 = arith.constant 0 : i32
    %c0_i32_0 = arith.constant 0 : i32
    %c0_i32_1 = arith.constant 0 : i32
    %c0_i32_2 = arith.constant 0 : i32
    return %c0_i32, %c0_i32_0, %c0_i32_1 : i32, i32, i32
  }
  func.func @transform_10(%arg0: i32) -> (i32, i32, i32) {
    %c0_i32 = arith.constant 0 : i32
    %c0_i32_0 = arith.constant 0 : i32
    %c0_i32_1 = arith.constant 0 : i32
    %c0_i32_2 = arith.constant 0 : i32
    return %c0_i32, %c0_i32_0, %c0_i32_1 : i32, i32, i32
  }
  func.func @transform_11(%arg0: i32) -> (i32, i32, i32) {
    %c0_i32 = arith.constant 0 : i32
    %c0_i32_0 = arith.constant 0 : i32
    %c0_i32_1 = arith.constant 0 : i32
    %c0_i32_2 = arith.constant 0 : i32
    return %c0_i32, %c0_i32_0, %c0_i32_1 : i32, i32, i32
  }
  func.func @transform_12(%arg0: i32) -> (i32, i32, i32) {
    %c0_i32 = arith.constant 0 : i32
    %c0_i32_0 = arith.constant 0 : i32
    %c0_i32_1 = arith.constant 0 : i32
    %c0_i32_2 = arith.constant 0 : i32
    return %c0_i32, %c0_i32_0, %c0_i32_1 : i32, i32, i32
  }
  func.func @transform_13(%arg0: i32) -> i32 {
    %c0_i32 = arith.constant 0 : i32
    %c0_i32_0 = arith.constant 0 : i32
    return %c0_i32 : i32
  }
  func.func @transform_14(%arg0: i32) -> (i32, i32, i32) {
    %c0_i32 = arith.constant 0 : i32
    %c0_i32_0 = arith.constant 0 : i32
    %c0_i32_1 = arith.constant 0 : i32
    %c0_i32_2 = arith.constant 0 : i32
    return %c0_i32, %c0_i32_0, %c0_i32_1 : i32, i32, i32
  }
  func.func @transform_15(%arg0: i32) -> (i32, i32, i32) {
    %c0_i32 = arith.constant 0 : i32
    %c0_i32_0 = arith.constant 0 : i32
    %c0_i32_1 = arith.constant 0 : i32
    %c0_i32_2 = arith.constant 0 : i32
    return %c0_i32, %c0_i32_0, %c0_i32_1 : i32, i32, i32
  }
  func.func @transform_16(%arg0: i32) -> (i32, i32, i32) {
    %c0_i32 = arith.constant 0 : i32
    %c0_i32_0 = arith.constant 0 : i32
    %c0_i32_1 = arith.constant 0 : i32
    return %arg0, %c0_i32, %c0_i32_0 : i32, i32, i32
  }
}

</mosaic_0001>

<bundles_post_ra>
// kernel: tpu_custom_call.1
= control target key start
LH: loop header
LB: loop body
LE: loop exit
PB: predicated region body
PF: predicated region fallthrough
CT: control target
= control target key end

     0   :  { %s3489_s0 = inlined_call_operand.hbm [shape: f32[2,8,32], index: 0, kind: input, shape index: {}]   ;;  %s3490_s1 = inlined_call_operand.vmem [shape: f32[1,32], index: 1, kind: input, shape index: {}]   ;;  %s3491_s2 = inlined_call_operand.hbm [shape: f32[1,32], index: 2, kind: input, shape index: {}]   ;;  %s3492_s3 = inlined_call_operand.hbm [shape: f32[1,32], index: 3, kind: input, shape index: {}]   ;;  %s3493_s4 = inlined_call_operand.hbm [shape: f32[1,32], index: 4, kind: input, shape index: {}]   ;;  %s3494_s5 = inlined_call_operand.vmem [shape: f32[32,32], index: 5, kind: input, shape index: {}]   ;;  %s3495_s6 = inlined_call_operand.vmem [shape: f32[32,32], index: 6, kind: input, shape index: {}]   ;;  %s3496_s7 = inlined_call_operand.vmem [shape: f32[32,32], index: 7, kind: input, shape index: {}]   ;;  %s3497_s8 = inlined_call_operand.hbm [shape: f32[32,32], index: 8, kind: input, shape index: {}]   ;;  %s3498_s9 = inlined_call_operand.hbm [shape: f32[4,8,32], index: 9, kind: input, shape index: {}]   ;;  %s3499_s10 = inlined_call_operand.hbm [shape: f32[4,8,8], index: 10, kind: input, shape index: {}]   ;;  %s3500_s11 = inlined_call_operand.vmem [shape: f32[4,8,1], index: 11, kind: input, shape index: {}]   ;;  %s3501_s12 = inlined_call_operand.vmem [shape: f32[4,8,1], index: 12, kind: input, shape index: {}]   ;;  %s3502_s13 = inlined_call_operand.vmem [shape: f32[4], index: 13, kind: input, shape index: {}]   ;;  %s3503_s14 = inlined_call_operand.vmem [shape: f32[4,1,8], index: 14, kind: input, shape index: {}]   ;;  %s3504_s15 = inlined_call_operand.vmem [shape: f32[4,1,8], index: 15, kind: input, shape index: {}]   ;;  %s3505_s16 = inlined_call_operand.hbm [shape: f32[2,8,32], index: 16, kind: output, shape index: {}]  }
   0x1   :  { %3515 = sst [smem:[#allocation23_spill]] %s3489_s0 }
   0x2   :  { %3516 = sst [smem:[#allocation24_spill]] %s3490_s1 }
   0x3   :  { %3517 = sst [smem:[#allocation25_spill]] %s3491_s2 }
   0x4   :  { %3518 = sst [smem:[#allocation26_spill]] %s3493_s4 }
   0x5   :  { %3519 = sst [smem:[#allocation27_spill]] %s3496_s7 }
   0x6   :  { %3520 = sst [smem:[#allocation28_spill]] %s3503_s14 }
   0x7   :  { %3521 = sst [smem:[#allocation29_spill]] %s3504_s15 }
   0x8   :  { %3522 = sst [smem:[#allocation30_spill]] %s3505_s16 }
   0x9   :  { %21 = vsyncpa [#allocation3], 0 }
   0xa   :  { %23 = vsyncpa [#allocation3 + $0x1], 0 }
   0xb   :  { %24 = vsyncpa [#allocation7], 0 }
   0xc   :  { %25 = vsyncpa [#allocation10], 0 }
   0xd   :  { %26 = vsyncpa [#allocation13], 0 }
   0xe   :  { %27 = vsyncpa [#allocation5], 0 }
   0xf   :  { %28 = vsyncpa [#allocation4], 0 }
  0x10   :  { %30 = vsyncpa [#allocation4 + $0x1], 0  ;;  %s2986_s11 = smov 0   ;;  %s2988_s12 = smov 0  }
  0x11   :  { %s2990_s21 = smov 0   ;;  %s2992_s22 = smov 0  }
  0x12 LB: > { %s2884_s23 = smov [#allocation6]   ;;  %s3007_s25 = sadd.s32 4294967295, %s2882_s22   ;;  %s2882_s22 = sphi %s2992_s22, %s3555_s22   ;;  %s2878_s21 = sphi %s2990_s21, %s3554_s21   ;;  %s2874_s12 = sphi %s2988_s12, %s3553_s12   ;;  %s2870_s11 = sphi %s2986_s11, %s3552_s11  }
  0x13   : > { %s424_s24 = sshll.u32 %s2884_s23, 4  ;;  %p2208_p0 = scmp.ge.s32.totalorder %s2882_s22, 1  ;;  %s3012_s24 = int_to_ptr.vmem [resolvable:$true] %s424_s24 }
  0x14   : > { %p3511_p1 = scmp.eq.s32.totalorder %s3007_s25, 0  ;;  %p408_p2 = scmp.lt.s32.totalorder %s2882_s22, 3 }
  0x15   : > { %s2885_s27 = smov [#allocation9]   ;;  %s2886_s30 = smov [#allocation12]  }
  0x16   : > { %p3014_p3 = pnand %p2208_p0, %p408_p2  ;;  %s446_s28 = sshll.u32 %s2885_s27, 4  ;;  %s3021_s28 = int_to_ptr.vmem [resolvable:$true] %s446_s28 }
  0x17   : > { %s478_s0 = sshll.u32 %s2886_s30, 4  ;;  %s3525_s2 = sld [smem:[#allocation25_spill]]  ;;  %s3029_s0 = int_to_ptr.vmem [resolvable:$true] %s478_s0 }
  0x18   : > { %s3523_s26 = scalar_select %p3014_p3, 1, 0 }
  0x19   : > { %p2482_p5 = pneg %p3014_p3 }
  0x1b   : > { %p3025_p6 = pnand %p2482_p5, %p3511_p1 }
  0x1d   : > { %s2587_s19 = scalar_lea.hbm %s3525_s2, 16  ;;  %p3039_p8 = pneg %p3025_p6 }
  0x1e   : > { %p2588_p7 = scmp.ne.s32.totalorder %s3525_s2, %s2587_s19  ;;  %p2594_p11 = scmp.lt.u32.totalorder %s2587_s19, %s3525_s2 }
  0x20   : > { %p2590_p9 = pnand %p3039_p8, %p2588_p7 }
  0x22   : > { %p2591_p10 = pneg %p2590_p9 }
  0x24   : > { %p2596_p12 = pnand %p2594_p11, %p2591_p10 }
  0x26   : > { %2599 = shalt.err (!%p2596_p12)
}
  0x27   : > { %s2600_s17 = scalar_lea.vmem %s3012_s24, 16  ;;  %s2607_s18 = scalar_lea.vmem %s3012_s24, 32 }
  0x28   : > { %p2601_p13 = scmp.ne.s32.totalorder %s3012_s24, %s2600_s17  ;;  %p2608_p5 = scmp.lt.s32.totalorder %s3012_s24, %s3012_s24 }
  0x29   : > { %p2609_p7 = scmp.lt.s32.totalorder %s2607_s18, %s2600_s17 }
  0x2a   : > { %p2603_p0 = pnand %p2601_p13, %p3039_p8 }
  0x2b   : > { %p2610_p9 = por %p2609_p7, %p2608_p5 }
  0x2c   : > { %p2604_p2 = pneg %p2603_p0 }
  0x2e   : > { %p2611_p4 = pnand %p2610_p9, %p2604_p2 }
  0x30   : > { %2614 = shalt.err (!%p2611_p4)
}
  0x31   : > { %2485 = dma.hbm_to_vmem [thread:$0]  (!%p3025_p6), %s3525_s2, 16, %s3012_s24, [#allocation7]  }
  0x32   : > { %s3527_s4 = sld [smem:[#allocation26_spill]] }
  0x38   : > { %s2615_s30 = scalar_lea.hbm %s3527_s4, 16 }
  0x39   : > { %p2616_p10 = scmp.ne.s32.totalorder %s3527_s4, %s2615_s30  ;;  %p2622_p4 = scmp.lt.u32.totalorder %s2615_s30, %s3527_s4 }
  0x3b   : > { %p2618_p11 = pnand %p2616_p10, %p3039_p8 }
  0x3d   : > { %p2619_p12 = pneg %p2618_p11 }
  0x3f   : > { %p2624_p13 = pnand %p2622_p4, %p2619_p12 }
  0x41   : > { %2627 = shalt.err (!%p2624_p13)
}
  0x42   : > { %s2628_s24 = scalar_lea.vmem %s3021_s28, 16  ;;  %s2635_s14 = scalar_lea.vmem %s3021_s28, 32 }
  0x43   : > { %p2629_p0 = scmp.ne.s32.totalorder %s3021_s28, %s2628_s24  ;;  %p2636_p7 = scmp.lt.s32.totalorder %s3021_s28, %s3021_s28 }
  0x44   : > { %p2637_p9 = scmp.lt.s32.totalorder %s2635_s14, %s2628_s24 }
  0x45   : > { %p2631_p2 = pnand %p2629_p0, %p3039_p8 }
  0x46   : > { %p2638_p10 = por %p2637_p9, %p2636_p7 }
  0x47   : > { %p2632_p5 = pneg %p2631_p2 }
  0x49   : > { %p2639_p11 = pnand %p2638_p10, %p2632_p5 }
  0x4b   : > { %2642 = shalt.err (!%p2639_p11)
}
  0x4c   : > { %2491 = dma.hbm_to_vmem [thread:$0]  (!%p3025_p6), %s3527_s4, 16, %s3021_s28, [#allocation10]  }
  0x4d   : > { %s2643_s23 = scalar_lea.hbm %s3498_s9, 512 }
  0x4e   : > { %p2644_p12 = scmp.ne.s32.totalorder %s3498_s9, %s2643_s23  ;;  %p2650_p0 = scmp.lt.u32.totalorder %s2643_s23, %s3498_s9 }
  0x50   : > { %p2646_p4 = pnand %p2644_p12, %p3039_p8 }
  0x52   : > { %p2647_p13 = pneg %p2646_p4 }
  0x54   : > { %p2652_p2 = pnand %p2650_p0, %p2647_p13 }
  0x56   : > { %2655 = shalt.err (!%p2652_p2)
}
  0x57   : > { %s2656_s28 = scalar_lea.vmem %s3029_s0, 512  ;;  %p2664_p10 = scmp.lt.s32.totalorder %s3029_s0, %s3029_s0 }
  0x58   : > { %p2657_p5 = scmp.ne.s32.totalorder %s3029_s0, %s2656_s28  ;;  %p2665_p11 = scmp.lt.s32.totalorder %s2656_s28, %s2656_s28 }
  0x5a   : > { %p2659_p7 = pnand %p2657_p5, %p3039_p8  ;;  %p2666_p12 = por %p2665_p11, %p2664_p10 }
  0x5c   : > { %p2660_p9 = pneg %p2659_p7 }
  0x5e   : > { %p2667_p4 = pnand %p2666_p12, %p2660_p9 }
  0x60   : > { %2670 = shalt.err (!%p2667_p4)
}
  0x61   : > { %s2887_s14 = smov 128   ;;  %s2888_s15 = smov 8  }
  0x62   : > { %2497 = dma.hbm_to_vmem [thread:$0]  (!%p3025_p6), %s3498_s9, 512, %s3029_s0, [#allocation13], %s2887_s14, %s2887_s14, %s2888_s15  }
  0x63   : > { %s2889_s20 = smov [#allocation8]   ;;  %s2890_s30 = smov [#allocation11]  }
  0x64   : > { %s435_s23 = sshll.u32 %s2889_s20, 4  ;;  %s465_s17 = sshll.u32 %s2890_s30, 4  ;;  %s436_s23 = int_to_ptr.vmem [resolvable:$true] %s435_s23  ;;  %s466_s17 = int_to_ptr.vmem [resolvable:$true] %s465_s17 }
  0x65   : > { %s2671_s28 = scalar_lea.hbm %s3492_s3, 16 }
  0x66   : > { %p2672_p13 = scmp.ne.s32.totalorder %s3492_s3, %s2671_s28  ;;  %p2678_p5 = scmp.lt.u32.totalorder %s2671_s28, %s3492_s3 }
  0x68   : > { %p2674_p0 = pnand %p2672_p13, %p3039_p8 }
  0x6a   : > { %p2675_p2 = pneg %p2674_p0 }
  0x6c   : > { %p2680_p7 = pnand %p2678_p5, %p2675_p2 }
  0x6e   : > { %2683 = shalt.err (!%p2680_p7)
}
  0x6f   : > { %s2684_s0 = scalar_lea.vmem %s436_s23, 16  ;;  %s2691_s16 = scalar_lea.vmem %s436_s23, 32 }
  0x70   : > { %p2685_p9 = scmp.ne.s32.totalorder %s436_s23, %s2684_s0  ;;  %p2692_p12 = scmp.lt.s32.totalorder %s436_s23, %s436_s23 }
  0x71   : > { %p2693_p4 = scmp.lt.s32.totalorder %s2691_s16, %s2684_s0 }
  0x72   : > { %p2687_p10 = pnand %p2685_p9, %p3039_p8 }
  0x73   : > { %p2694_p1 = por %p2693_p4, %p2692_p12 }
  0x74   : > { %p2688_p11 = pneg %p2687_p10 }
  0x76   : > { %p2695_p3 = pnand %p2694_p1, %p2688_p11 }
  0x78   : > { %2698 = shalt.err (!%p2695_p3)
}
  0x79   : > { %2488 = dma.hbm_to_vmem [thread:$0]  (!%p3025_p6), %s3492_s3, 16, %s436_s23, [#allocation7]  }
  0x7a   : > { %s2699_s19 = scalar_lea.hbm %s3497_s8, 512 }
  0x7b   : > { %p2700_p13 = scmp.ne.s32.totalorder %s3497_s8, %s2699_s19  ;;  %p2706_p3 = scmp.lt.u32.totalorder %s2699_s19, %s3497_s8 }
  0x7d   : > { %p2702_p0 = pnand %p2700_p13, %p3039_p8 }
  0x7f   : > { %p2703_p1 = pneg %p2702_p0 }
  0x81   : > { %p2708_p2 = pnand %p2706_p3, %p2703_p1 }
  0x83   : > { %2711 = shalt.err (!%p2708_p2)
}
  0x84   : > { %s2712_s28 = scalar_lea.vmem %s466_s17, 512  ;;  %p2720_p10 = scmp.lt.s32.totalorder %s466_s17, %s466_s17 }
  0x85   : > { %p2713_p5 = scmp.ne.s32.totalorder %s466_s17, %s2712_s28  ;;  %p2721_p11 = scmp.lt.s32.totalorder %s2712_s28, %s2712_s28 }
  0x87   : > { %p2715_p7 = pnand %p2713_p5, %p3039_p8  ;;  %p2722_p12 = por %p2721_p11, %p2720_p10 }
  0x89   : > { %p2716_p9 = pneg %p2715_p7 }
  0x8b   : > { %p2723_p4 = pnand %p2722_p12, %p2716_p9 }
  0x8d   : > { %2726 = shalt.err (!%p2723_p4)
}
  0x8e   : > { %2494 = dma.hbm_to_vmem [thread:$0]  (!%p3025_p6), %s3497_s8, 512, %s466_s17, [#allocation10], %s2887_s14, %s2887_s14, %s2888_s15  }
  0x8f   : > { %s2891_s16 = smov [#allocation14]   ;;  %s511_s7 = sshll.u32 %s3502_s13, 4  ;;  %s512_s7 = int_to_ptr.vmem [resolvable:$true] %s511_s7 }
  0x90   : > { %s491_s2 = sshll.u32 %s2891_s16, 4  ;;  %s2727_s30 = scalar_lea.hbm %s3499_s10, 512  ;;  %s492_s2 = int_to_ptr.vmem [resolvable:$true] %s491_s2 }
  0x91   : > { %p2728_p13 = scmp.ne.s32.totalorder %s3499_s10, %s2727_s30  ;;  %p2734_p3 = scmp.lt.u32.totalorder %s2727_s30, %s3499_s10 }
  0x93   : > { %p2730_p0 = pnand %p2728_p13, %p3039_p8 }
  0x95   : > { %p2731_p1 = pneg %p2730_p0 }
  0x97   : > { %p2736_p2 = pnand %p2734_p3, %p2731_p1 }
  0x99   : > { %2739 = shalt.err (!%p2736_p2)
}
  0x9a   : > { %s2740_s23 = scalar_lea.vmem %s492_s2, 512  ;;  %p2748_p10 = scmp.lt.s32.totalorder %s492_s2, %s492_s2 }
  0x9b   : > { %p2741_p5 = scmp.ne.s32.totalorder %s492_s2, %s2740_s23  ;;  %p2749_p11 = scmp.lt.s32.totalorder %s2740_s23, %s2740_s23 }
  0x9d   : > { %p2743_p7 = pnand %p2741_p5, %p3039_p8  ;;  %p2750_p12 = por %p2749_p11, %p2748_p10 }
  0x9f   : > { %p2744_p9 = pneg %p2743_p7 }
  0xa1   : > { %p2751_p4 = pnand %p2750_p12, %p2744_p9 }
  0xa3   : > { %2754 = shalt.err (!%p2751_p4)
}
  0xa4   : > { %2500 = dma.hbm_to_vmem [thread:$0]  (!%p3025_p6), %s3499_s10, 512, %s492_s2, [#allocation13], %s2887_s14, %s2887_s14, %s2888_s15  }
  0xa5   : > { %s2755_s4 = scalar_lea.vmem %s512_s7, 16  ;;  %p2763_p3 = scmp.lt.s32.totalorder %s512_s7, %s512_s7 }
  0xa6   : > { %p2756_p13 = scmp.ne.s32.totalorder %s512_s7, %s2755_s4  ;;  %p2764_p2 = scmp.lt.s32.totalorder %s2755_s4, %s2755_s4 }
  0xa8   : > { %p2758_p0 = pnand %p2756_p13, %p3039_p8  ;;  %p2765_p5 = por %p2764_p2, %p2763_p3 }
  0xaa   : > { %p2759_p1 = pneg %p2758_p0 }
  0xac   : > { %p2766_p7 = pnand %p2765_p5, %p2759_p1 }
  0xae   : > { %2769 = shalt.err (!%p2766_p7)
}
  0xaf   : > { %s2892_s1 = smov [#allocation15]   ;;  %s2207_s27 = sadd.s32 4294967294, %s2882_s22  }
  0xb0   : > { %2503 = dma.vmem_to_smem (!%p3025_p6), %s512_s7, 16, %s2892_s1, [#allocation5]  }
  0xb1   : > { %s3180_s14 = sadd.s32 1, %s2882_s22   ;;  %s43_s29 = sadd.s32 1, %s2878_s21 }
  0xb2   : > { %s40_s15 = ssub.s32 %s2882_s22, %s3180_s14  ;;  %p50_p8 = scmp.ne.s32.totalorder %s2878_s21, %s2874_s12 }
  0xb3   : > { %p41_p9 = scmp.eq.s32.totalorder %s40_s15, 0  ;;  %p51_p10 = scmp.eq.s32.totalorder %s2882_s22, 0 }
  0xb4   : > { %p56_p11 = scmp.ne.s32.totalorder %s2874_s12, %s2870_s11  ;;  %p395_p12 = scmp.eq.s32.totalorder %s3007_s25, 1 }
  0xb5   : > { %s3192_s2 = scalar_select %p41_p9, %s2878_s21, %s43_s29  }
  0xb6   : > { %p52_p4 = por %p51_p10, %p50_p8  ;;  %p3528_p13 = scmp.eq.s32.totalorder %s3007_s25, 0 }
  0xb7   : > { %p3200_p6 = por %p395_p12, %p50_p8  ;;  %p401_p1 = scmp.eq.s32.totalorder %s2207_s27, 1 }
  0xb8   : > { %p3196_p0 = por %p3528_p13, %p56_p11  ;;  %p2519_p3 = scmp.lt.s32.totalorder %s2882_s22, 2 }
  0xb9   : > { %s3530_s7 = scalar_select %p3200_p6, 1, 0 }
  0xba   : > { %s528_s20 = sand.u32 1, %s2878_s21   ;;  %p3206_p2 = por %p401_p1, %p56_p11 }
  0xbb   : > { %s2217_s18 = sshll.u32 %s528_s20, 3  ;;  %s2218_s24 = sshll.u32 %s2882_s22, 7 }
  0xbc   : > { %s3531_s30 = scalar_select %p3206_p2, 1, 0 }
  0xbd   : > { %s3532_s23 = sld [smem:[#allocation23_spill]]  ;;  %s532_s16 = scalar_lea.vmem [#allocation2], %s2217_s18 }
  0xbe   : > { %s539_s4 = sshll.u32 %s532_s16, 4  ;;  %p3216_p5 = pnand %p2519_p3, %p52_p4  ;;  %s3220_s4 = int_to_ptr.vmem [resolvable:$true] %s539_s4 }
  0xbf   : > { %s529_s27 = scalar_lea.sflag [#allocation3], %s528_s20 }
  0xc0   : > { %p2772_p8 = pneg %p3216_p5 }
  0xc3   : > { %s3214_s0 = scalar_lea.hbm %s3532_s23, %s2218_s24  ;;  %s2775_s24 = scalar_lea.hbm %s3532_s23, 256 }
  0xc4   : > { %s2770_s29 = scalar_lea.hbm %s3214_s0, 128  ;;  %p2776_p11 = scmp.lt.u32.totalorder %s3214_s0, %s3532_s23 }
  0xc5   : > { %p2771_p7 = scmp.ne.s32.totalorder %s3214_s0, %s2770_s29  ;;  %p2777_p12 = scmp.lt.u32.totalorder %s2775_s24, %s2770_s29 }
  0xc6   : > { %p2779_p13 = scmp.lt.u32.totalorder %s2770_s29, %s3214_s0 }
  0xc7   : > { %p2773_p9 = pnand %p2772_p8, %p2771_p7  ;;  %p2778_p4 = por %p2777_p12, %p2776_p11 }
  0xc9   : > { %p2774_p10 = pneg %p2773_p9  ;;  %p2780_p1 = por %p2779_p13, %p2778_p4 }
  0xcb   : > { %p2781_p3 = pnand %p2780_p1, %p2774_p10 }
  0xcd   : > { %2784 = shalt.err (!%p2781_p3)
}
  0xce   : > { %s2785_s20 = scalar_lea.vmem %s3220_s4, 128  ;;  %s2893_s16 = smov [#allocation2]  }
  0xcf   : > { %p2786_p7 = scmp.ne.s32.totalorder %s3220_s4, %s2785_s20  ;;  %s2790_s15 = sshll.u32 %s2893_s16, 4  ;;  %s2791_s15 = int_to_ptr.vmem [resolvable:$false] %s2790_s15 }
  0xd0   : > { %s2792_s18 = scalar_lea.vmem %s2791_s15, 256  ;;  %p2793_p6 = scmp.lt.s32.totalorder %s3220_s4, %s2791_s15 }
  0xd1   : > { %p2788_p9 = pnand %p2786_p7, %p2772_p8  ;;  %p2794_p11 = scmp.lt.s32.totalorder %s2792_s18, %s2785_s20 }
  0xd3   : > { %p2789_p2 = pneg %p2788_p9  ;;  %p2795_p12 = por %p2794_p11, %p2793_p6 }
  0xd5   : > { %p2796_p4 = pnand %p2795_p12, %p2789_p2 }
  0xd7   : > { %2799 = shalt.err (!%p2796_p4)
}
  0xd8   : > { %2507 = dma.hbm_to_vmem [thread:$0]  (!%p3216_p5), %s3214_s0, 128, %s3220_s4, %s529_s27  }
  0xd9   : > { %p3534_p10 = scmp.ne.s32.totalorder %s3523_s26, 0 }
  0xda   : > { %s3250_s29 = sand.u32 (!%p3534_p10), 1, %s2874_s12  }
  0xdb   : > { %548 = sbr.rel (%p3534_p10) target bundleno = 2302 (0x8fe), region = 84  ;;  %s3514_s24 = sshll.u32 (!%p3534_p10), %s3250_s29, 3 }
  0xdc   : > { %s551_s17 = scalar_lea.sflag (!%p3534_p10), [#allocation3], %s3250_s29  ;;  %s554_s28 = scalar_lea.vmem (!%p3534_p10), [#allocation2], %s3514_s24 }
  0xe2   : > { %2845 = dma.done.wait (%p3196_p0), %s551_s17, 128  }
  0xe3   : > { %2847 = vsyncadd (%p3196_p0), %s551_s17, 4294967168  ;;  %p3535_p6 = scmp.eq.s32.totalorder %s3007_s25, 0 }
  0xe5   : > { %2849 = dma.done.wait (%p3535_p6), [#allocation7], 32   ;;  %p3536_p2 = pmov %p3535_p6 }
  0xe7   : > { %2851 = vsyncadd (%p3536_p2), [#allocation7], 4294967264  ;;  %p3537_p5 = pmov %p3536_p2 }
  0xe8   : > { %p3538_p8 = pmov %p3536_p2 }
  0xe9   : > { %2853 = dma.done.wait (%p3537_p5), [#allocation10], 528  }
  0xea   : > { %2855 = vsyncadd (%p3538_p8), [#allocation10], 4294966768  ;;  %p3539_p13 = pmov %p3536_p2 }
  0xeb   : > { %p3540_p1 = pmov %p3536_p2 }
  0xec   : > { %2857 = dma.done.wait (%p3539_p13), [#allocation13], 1024  }
  0xed   : > { %2859 = vsyncadd (%p3540_p1), [#allocation13], 4294966272  ;;  %p3541_p0 = pmov %p3540_p1 }
  0xef   : > { %2861 = dma.done.wait (%p3541_p0), [#allocation5], 16   ;;  %p3542_p3 = pmov %p3541_p0 }
  0xf1   : > { %2863 = vsyncadd (%p3542_p3), [#allocation5], 4294967280 }
  0xf2   : > { %587 = sfence }
  0xf3   : > { %v675_v0 = vld [vmem:[%s3494_s5] sm:$0xff]  ;;  %v676_v1 = vld [vmem:[%s3494_s5 + $0x8] sm:$0xff]  ;;  %v634_v3 = vlaneseq  ;;  %v2894_v4 = vmov 0.0|0.0   ;;  %v677_v7 = vld [vmem:[%s3494_s5 + $0x10] sm:$0xff]  ;;  %vm2895_vm0 = vmmov 0   ;;  %v2896_v12 = vmov 0.0  }
  0xf4   : > { %v753_v2 = vld [vmem:[%s3495_s6] sm:$0xff]  ;;  %2420 = vmatprep.subr.bf16.mxu0 %v2894_v4  ;;  %v2421_v5 = vpack.c.bf16 %v676_v1, %v675_v0  ;;  %2426 = vmatprep.subr.bf16.mxu1 %v2894_v4  ;;  %v754_v6 = vld [vmem:[%s3495_s6 + $0x8] sm:$0xff]  ;;  %v678_v8 = vld [vmem:[%s3494_s5 + $0x18] sm:$0xff]  ;;  %s3543_s16 = sld [smem:[#allocation24_spill]]  ;;  %s3544_s17 = sld [smem:[#allocation27_spill]]  ;;  %vm679_vm2 = vcmask 261120  }
  0xf5   : > { %v2427_v9 = vpack.c.bf16 %v754_v6, %v753_v2  ;;  %v755_v10 = vld [vmem:[%s3495_s6 + $0x10] sm:$0xff]  ;;  %v756_v11 = vld [vmem:[%s3495_s6 + $0x18] sm:$0xff]  ;;  %2324 = vmatprep.mubr.msk.f32.mxu0 %vm2895_vm0, %v2896_v12  ;;  %2335 = vmatprep.mubr.msk.f32.mxu1 %vm2895_vm0, %v2896_v12  ;;  %v632_v13 = vld [vmem:[%s554_s28] sm:$0xff]  ;;  %v635_v14 = vshrl.u32 %v634_v3, 7  ;;  %v2424_v15 = vpack.c.bf16 %v678_v8, %v677_v7  ;;  %vm992_vm3 = vcmask 64512   ;;  %s2897_s27 = smov 120  }
  0xf6   : > { %2422 = vmatpush3.bf16.msra.mxu0 %v2421_v5  ;;  %v633_v16 = vrot.slane %v632_v13, 7  ;;  %v2430_v17 = vpack.c.bf16 %v756_v11, %v755_v10  ;;  %v2231_v19 = vld [vmem:[#allocation8] ss:$0 sm:$0xff]  ;;  %v907_v24 = vld [vmem:[#allocation11] sm:$0xff]  ;;  %v908_v25 = vld [vmem:[#allocation11 + $0x8] sm:$0xff]  ;;  %s2898_s20 = smov 112  }
  0xf7   : > { %2428 = vmatpush3.bf16.msra.mxu1 %v2427_v9  ;;  %2423 = vmatprep.subr.bf16.mxu0 %v2894_v4  ;;  %vm636_vm1 = vcmp.eq.s32.totalorder %v635_v14, 0  ;;  %v2230_v29 = vld [vmem:[#allocation6] ss:$0 sm:$0xff]  ;;  %v2439_v34 = vpack.c.bf16 %v908_v25, %v907_v24  ;;  %v909_v35 = vld [vmem:[#allocation11 + $0x10] sm:$0xff]  ;;  %v2232_v41 = vld [vmem:[#allocation9] ss:$0 sm:$0xff] }
  0xf8   : > { %2429 = vmatprep.subr.bf16.mxu1 %v2894_v4  ;;  %v637_v18 = vsel %vm636_vm1, 0.0, %v633_v16  ;;  %v910_v36 = vld [vmem:[#allocation11 + $0x18] sm:$0xff]  ;;  %v991_v54 = vld [vmem:[#allocation14] sm:$0xff]  ;;  %v1176_v59 = vld [vmem:[#allocation14 + $0x8] sm:$0xff]  ;;  %s3545_s28 = sld [smem:[#allocation28_spill]]  ;;  %s3546_s0 = sld [smem:[#allocation29_spill]] }
  0xf9   : > { %v638_v21 = vsub.f32 %v637_v18, %v632_v13  ;;  %v2442_v39 = vpack.c.bf16 %v910_v36, %v909_v35  ;;  %v1518_v8 = vld [vmem:[#allocation14 + $0x10] sm:$0xff]  ;;  %v1370_v35 = vld [vmem:[#allocation12 + $0x8] sm:$0xff]  ;;  %s3548_s26 = sld [smem:[#allocation30_spill]]  ;;  %s2055_s4 = scalar_lea.sflag [#allocation4], %s3250_s29 }
  0xfa   : > { %v2229_v20 = vld [vmem:[%s3543_s16] ss:$0 sm:$0xff]  ;;  %v831_v23 = vld [vmem:[%s3544_s17 + $0x8] sm:$0xff]  ;;  %2425 = vmatpush3.bf16.msra.mxu0 %v2424_v15  ;;  %v832_v32 = vld [vmem:[%s3544_s17 + $0x10] sm:$0xff]  ;;  %s2899_s16 = smov 104   ;;  %p3549_p9 = scmp.ne.s32.totalorder %s3530_s7, 0 }
  0xfb   : > { %v830_v22 = vld [vmem:[%s3544_s17] sm:$0xff]  ;;  %2431 = vmatpush3.bf16.msra.mxu1 %v2430_v17  ;;  %2432 = vmatprep.subr.bf16.mxu0 %v2894_v4  ;;  %v664_v26 = vmul.f32 %v2231_v19, %v638_v21  ;;  %v646_v27 = vmul.f32 %v2229_v20, %v638_v21  ;;  %v833_v33 = vld [vmem:[%s3544_s17 + $0x18] sm:$0xff]  ;;  %v655_v37 = vmul.f32 %v2230_v29, %v638_v21 }
  0xfc   : > { %v2433_v28 = vpack.c.bf16 %v831_v23, %v830_v22  ;;  %2438 = vmatprep.subr.bf16.mxu1 %v2894_v4  ;;  %v2436_v38 = vpack.c.bf16 %v833_v33, %v832_v32  ;;  %v673_v42 = vmul.f32 %v2232_v41, %v638_v21 }
  0xfd   : > { %v665_v30 = vadd.f32 %v664_v26, %v632_v13  ;;  %v647_v31 = vadd.f32 %v646_v27, %v632_v13  ;;  %v656_v40 = vadd.f32 %v655_v37, %v632_v13 }
  0xfe   : > { %v674_v43 = vadd.f32 %v673_v42, %v632_v13 }
  0xff   : > { %2325 = vmatmul.mubr.msk.f32.vlgmr.msra.gmra.mrb[0].mxu0 %vm679_vm2, %v665_v30  ;;  %2336 = vmatmul.mubr.msk.f32.vlgmr.msra.gmra.mrb[0].mxu1 %vm679_vm2, %v647_v31 }
 0x100   : > { %2434 = vmatpush3.bf16.msra.mxu0 %v2433_v28  ;;  %2346 = vmatprep.mubr.msk.f32.mxu0 %vm2895_vm0, %v2896_v12 }
 0x101   : > { %2435 = vmatprep.subr.bf16.mxu0 %v2894_v4  ;;  %2440 = vmatpush3.bf16.msra.mxu1 %v2439_v34 }
 0x102   : > { %2441 = vmatprep.subr.bf16.mxu1 %v2894_v4  ;;  %2357 = vmatprep.mubr.msk.f32.mxu1 %vm2895_vm0, %v2896_v12 }
 0x104   : > { %2437 = vmatpush3.bf16.msra.mxu0 %v2436_v38 }
 0x105   : > { %2443 = vmatpush3.bf16.msra.mxu1 %v2442_v39  ;;  %2370 = vmatprep.subr.mxu0 %v2896_v12 }
 0x106   : > { %2360 = vmatprep.subr.mxu1 %v2896_v12 }
 0x107   : > { %2347 = vmatmul.mubr.msk.f32.vlgmr.msra.gmra.mrb[2].mxu0 %vm679_vm2, %v656_v40 }
 0x108   : > { %2372 = vmatprep.mubr.msk.f32.mxu0 %vm2895_vm0, %v2896_v12  ;;  %2358 = vmatmul.mubr.msk.f32.vlgmr.msra.gmra.mrb[2].mxu1 %vm679_vm2, %v674_v43 }
 0x109   : > { %2362 = vmatprep.mubr.msk.f32.mxu1 %vm2895_vm0, %v2896_v12 }
 0x1d2   : > { %v826_v44 = vpop.f32.mrb[0].mxu1  ;;  %v749_v45 = vpop.f32.mrb[0].mxu0 }
 0x1d3   : > { %1179 = vrot.lane.b32.xlu0 %v826_v44, %s2897_s27  ;;  %v2337_v46 = vpop.f32.mrb[1].mxu1  ;;  %2361 = vmatpush3.xpose.msk.msra.mxu1 %vm992_vm3, %v826_v44  ;;  %v2326_v47 = vpop.f32.mrb[1].mxu0 }
 0x1d4   : > { %2365 = vmatprep.subr.mxu1 %v2896_v12 }
 0x1d6   : > { %2363 = vmatmul.mubr.msk.f32.vlgmr.msra.gmra.mrb[4].mxu1 %vm992_vm3, %v749_v45 }
 0x1d7   : > { %1177 = vrot.lane.b32.xlu0 %v749_v45, %s2897_s27  ;;  %2367 = vmatprep.mubr.msk.f32.mxu1 %vm2895_vm0, %v2896_v12 }
 0x1da   : > { %v3340_v48 = vpop.f32.mrb[2].mxu0 }
 0x1db   : > { %1257 = vrot.lane.b32.xlu1 %v3340_v48, %s2897_s27  ;;  %1519 = vrot.lane.b32.xlu0 %v749_v45, %s2898_s20  ;;  %v2348_v49 = vpop.f32.mrb[3].mxu0  ;;  %v980_v50 = vpop.f32.mrb[2].mxu1 }
 0x1dc   : > { %2366 = vmatpush3.msra.mxu1 %v3340_v48  ;;  %v2359_v51 = vpop.f32.mrb[3].mxu1  ;;  %v2237_v15 = vmul.f32 -1.442695, %v980_v50  ;;  %v2247_v49 = vld [vmem:[%s3545_s28 + $0x1] ss:$0 sm:$0xff] }
 0x1dd   : > { %2375 = vmatprep.subr.mxu1 %v2896_v12  ;;  %v2249_v51 = vld [vmem:[%s3546_s0 + $0x1] ss:$0 sm:$0xff] }
 0x1de   : > { %2575 = vpow2.f32 %v2237_v15 }
 0x1df   : > { %1521 = vrot.lane.b32.xlu1 %v826_v44, %s2898_s20  ;;  %1789 = vrot.lane.b32.xlu0 %v826_v44, %s2899_s16 }
 0x1e3   : > { %1598 = vrot.lane.b32.xlu1 %v3340_v48, %s2898_s20 }
 0x1e7   : > { %1787 = vrot.lane.b32.xlu1 %v749_v45, %s2899_s16 }
 0x1e8   : > { %v2576_v18 = vpop.eup %2575 }
 0x1e9   : > { %v987_v21 = vadd.f32 1.0, %v2576_v18 }
 0x1eb   : > { %2577 = vrcp.f32 %v987_v21 }
 0x1f5   : > { %v2578_v23 = vpop.eup %2577 }
 0x1f6   : > { %v3378_v24 = vmul.f32 %v2578_v23, %v980_v50  ;;  %v1978_v23 = vld [vmem:[#allocation12 + $0x18] sm:$0xff] }
 0x245   : > { %v1180_v52 = vpop.permute.xlu0 %1179 }
 0x246   : > { %2371 = vmatpush3.xpose.msk.msra.mxu0 %vm992_vm3, %v1180_v52 }
 0x247   : > { %2380 = vmatprep.subr.mxu0 %v2896_v12 }
 0x249   : > { %v1178_v53 = vpop.permute.xlu0 %1177 }
 0x24a   : > { %2373 = vmatmul.mubr.msk.f32.vlgmr.msra.gmra.mrb[4].mxu0 %vm992_vm3, %v1178_v53 }
 0x24b   : > { %2382 = vmatprep.mubr.msk.f32.mxu0 %vm2895_vm0, %v2896_v12  ;;  %2381 = vmatpush3.msra.mxu0 %v1370_v35 }
 0x24c   : > { %2385 = vmatprep.subr.mxu0 %v2896_v12 }
 0x24d   : > { %v1258_v58 = vpop.permute.xlu1 %1257  ;;  %v1520_v0 = vpop.permute.xlu0 %1519 }
 0x251   : > { %v1522_v61 = vpop.permute.xlu1 %1521  ;;  %v1790_v13 = vpop.permute.xlu0 %1789 }
 0x255   : > { %v1599_v1 = vpop.permute.xlu1 %1598 }
 0x259   : > { %v1788_v14 = vpop.permute.xlu1 %1787 }
 0x2a9   : > { %v1065_v55 = vpop.f32.mrb[4].mxu1 }
 0x2aa   : > { %v1069_v56 = vmul.f32 %v1065_v55, %v991_v54  ;;  %v2364_v57 = vpop.f32.mrb[5].mxu1  ;;  %v2241_v54 = vld [vmem:[%s3545_s28] ss:$0 sm:$0xff] }
 0x2ac   : > { %2368 = vmatmul.mubr.msk.f32.vlgmr.msra.gmra.mrb[6].mxu1 %vm992_vm3, %v1069_v56 }
 0x2ad   : > { %2376 = vmatpush3.msra.mxu1 %v1258_v58  ;;  %2377 = vmatprep.mubr.msk.f32.mxu1 %vm2895_vm0, %v2896_v12 }
 0x2ae   : > { %2390 = vmatprep.subr.mxu1 %v2896_v12 }
 0x31d   : > { %v1251_v60 = vpop.f32.mrb[4].mxu0 }
 0x31e   : > { %v1255_v62 = vmul.f32 %v1251_v60, %v1176_v59  ;;  %v2374_v63 = vpop.f32.mrb[5].mxu0  ;;  %v1174_v59 = vld [vmem:[#allocation12] sm:$0xff]  ;;  %v2242_v60 = vld [vmem:[%s3546_s0] ss:$0 sm:$0xff] }
 0x31f   : > { %v1710_v63 = vld [vmem:[#allocation12 + $0x10] sm:$0xff] }
 0x320   : > { %2378 = vmatmul.mubr.msk.f32.vlgmr.msra.gmra.mrb[8].mxu1 %vm992_vm3, %v1255_v62 }
 0x321   : > { %2391 = vmatpush3.xpose.msk.msra.mxu1 %vm992_vm3, %v1522_v61  ;;  %2392 = vmatprep.mubr.msk.f32.mxu1 %vm2895_vm0, %v2896_v12 }
 0x322   : > { %2395 = vmatprep.subr.mxu1 %v2896_v12 }
 0x324   : > { %2393 = vmatmul.mubr.msk.f32.vlgmr.msra.gmra.mrb[10].mxu1 %vm992_vm3, %v1520_v0 }
 0x325   : > { %2396 = vmatpush3.msra.mxu1 %v1599_v1  ;;  %2397 = vmatprep.mubr.msk.f32.mxu1 %vm2895_vm0, %v2896_v12 }
 0x326   : > { %2405 = vmatprep.subr.mxu1 %v2896_v12 }
 0x37f   : > { %v1139_v2 = vpop.f32.mrb[6].mxu1 }
 0x380   : > { %v2369_v3 = vpop.f32.mrb[7].mxu1  ;;  %v1143_v4 = vsel %vm992_vm3, %v1139_v2, 0.0 }
 0x381   : > { %1144 = vadd.xlane.f32.xlu1 %v1143_v4  ;;  %v2256_v4 = vld [vmem:[%s3545_s28 + $0x2] ss:$0 sm:$0xff] }
 0x3f3   : > { %v1329_v5 = vpop.f32.mrb[8].mxu1 }
 0x3f4   : > { %v2379_v6 = vpop.f32.mrb[9].mxu1  ;;  %v1333_v7 = vsel %vm992_vm3, %v1329_v5, 0.0 }
 0x3f5   : > { %1334 = vadd.xlane.f32.xlu0 %v1333_v7  ;;  %v2258_v6 = vld [vmem:[%s3546_s0 + $0x2] ss:$0 sm:$0xff] }
 0x3f7   : > { %v1593_v9 = vpop.f32.mrb[10].mxu1 }
 0x3f8   : > { %v1597_v10 = vmul.f32 %v1593_v9, %v1518_v8  ;;  %v2394_v11 = vpop.f32.mrb[11].mxu1 }
 0x3f9   : > { %v1786_v11 = vld [vmem:[#allocation14 + $0x18] sm:$0xff] }
 0x3fa   : > { %2398 = vmatmul.mubr.msk.f32.vlgmr.msra.gmra.mrb[12].mxu1 %vm992_vm3, %v1597_v10 }
 0x3fb   : > { %2406 = vmatpush3.xpose.msk.msra.mxu1 %vm992_vm3, %v1790_v13  ;;  %2407 = vmatprep.mubr.msk.f32.mxu1 %vm2895_vm0, %v2896_v12 }
 0x3fe   : > { %2408 = vmatmul.mubr.msk.f32.vlgmr.msra.gmra.mrb[14].mxu1 %vm992_vm3, %v1788_v14 }
 0x40e   : > { %v1145_v16 = vpop.xlane.xlu1 %1144 }
 0x40f   : > { %v1147_v17 = vmul.f32 0.125, %v1145_v16 }
 0x411   : > { %v1148_v19 = vsub.f32 %v1139_v2, %v1147_v17 }
 0x413   : > { %v1149_v20 = vmul.f32 %v1148_v19, %v1148_v19 }
 0x415   : > { %v1150_v22 = vsel %vm992_vm3, %v1149_v20, 0.0 }
 0x416   : > { %1151 = vadd.xlane.f32.xlu1 %v1150_v22 }
 0x427   : > { %1365 = vrot.lane.b32.xlu1 %v3378_v24, %s2897_s27  ;;  %s3547_s27 = sshll.u32 %s3250_s29, 3 }
 0x428   : > { %s631_s24 = scalar_lea.vmem [#allocation16], %s3547_s27 }
 0x42b   : > { %1866 = vrot.lane.b32.xlu1 %v3340_v48, %s2899_s16 }
 0x482   : > { %v1335_v25 = vpop.xlane.xlu0 %1334 }
 0x483   : > { %v1336_v26 = vmul.f32 0.125, %v1335_v25 }
 0x485   : > { %v1337_v27 = vsub.f32 %v1329_v5, %v1336_v26 }
 0x487   : > { %v1338_v31 = vmul.f32 %v1337_v27, %v1337_v27 }
 0x489   : > { %v1339_v34 = vsel %vm992_vm3, %v1338_v31, 0.0 }
 0x4a3   : > { %v1152_v36 = vpop.xlane.xlu1 %1151 }
 0x4a4   : > { %v1153_v37 = vmul.f32 0.125, %v1152_v36 }
 0x4a6   : > { %v1154_v41 = vadd.f32 0.00064, %v1153_v37 }
 0x4a7   : > { %v1366_v56 = vpop.permute.xlu1 %1365 }
 0x4a8   : > { %2579 = vrsqrt.f32 %v1154_v41 }
 0x4ab   : > { %v1867_v13 = vpop.permute.xlu1 %1866 }
 0x4b2   : > { %v2580_v47 = vpop.eup %2579 }
 0x4b3   : > { %v1156_v52 = vmul.f32 %v2580_v47, %v1148_v19 }
 0x4b5   : > { %v1164_v57 = vmul.f32 %v2241_v54, %v1156_v52 }
 0x4b7   : > { %v1172_v61 = vadd.f32 %v2242_v60, %v1164_v57 }
 0x4b9   : > { %v1173_v62 = vmul.f32 %v1172_v61, %v3378_v24 }
 0x4cd   : > { %v1670_v28 = vpop.f32.mrb[12].mxu1 }
 0x4ce   : > { %v2399_v29 = vpop.f32.mrb[13].mxu1  ;;  %v1674_v30 = vsel %vm992_vm3, %v1670_v28, 0.0 }
 0x4cf   : > { %1675 = vadd.xlane.f32.xlu0 %v1674_v30  ;;  %v2266_v30 = vld [vmem:[%s3546_s0 + $0x3] ss:$0 sm:$0xff] }
 0x4d1   : > { %v3385_v32 = vpop.f32.mrb[14].mxu1 }
 0x4d2   : > { %v2409_v33 = vpop.f32.mrb[15].mxu1  ;;  %v1865_v14 = vmul.f32 %v3385_v32, %v1786_v11 }
 0x4d3   : > { %1340 = vadd.xlane.f32.xlu0 %v1339_v34 }
 0x55c   : > { %v1676_v38 = vpop.xlane.xlu0 %1675 }
 0x55d   : > { %v1677_v39 = vmul.f32 0.125, %v1676_v38 }
 0x55f   : > { %v1678_v40 = vsub.f32 %v1670_v28, %v1677_v39  ;;  %v2264_v28 = vld [vmem:[%s3545_s28 + $0x3] ss:$0 sm:$0xff] }
 0x560   : > { %v1341_v42 = vpop.xlane.xlu0 %1340 }
 0x561   : > { %v1342_v43 = vmul.f32 0.125, %v1341_v42  ;;  %v1679_v44 = vmul.f32 %v1678_v40, %v1678_v40 }
 0x563   : > { %v1343_v45 = vadd.f32 0.00064, %v1342_v43  ;;  %v1680_v46 = vsel %vm992_vm3, %v1679_v44, 0.0 }
 0x564   : > { %1681 = vadd.xlane.f32.xlu0 %v1680_v46 }
 0x565   : > { %2581 = vrsqrt.f32 %v1343_v45 }
 0x56f   : > { %v2582_v48 = vpop.eup %2581 }
 0x570   : > { %v1345_v50 = vmul.f32 %v2582_v48, %v1337_v27 }
 0x572   : > { %v1354_v53 = vmul.f32 %v2247_v49, %v1345_v50 }
 0x574   : > { %v1363_v55 = vadd.f32 %v2249_v51, %v1354_v53 }
 0x576   : > { %v1368_v58 = vmul.f32 %v1366_v56, %v1363_v55 }
 0x578   : > { %2383 = vmatmul.mubr.msk.f32.vlgmr.msra.gmra.mrb[6].mxu0 %vm992_vm3, %v1368_v58 }
 0x579   : > { %2386 = vmatpush3.msra.mxu0 %v1174_v59  ;;  %2387 = vmatprep.mubr.msk.f32.mxu0 %vm2895_vm0, %v2896_v12 }
 0x57a   : > { %1705 = vrot.lane.b32.xlu0 %v3378_v24, %s2898_s20  ;;  %2400 = vmatprep.subr.mxu0 %v2896_v12  ;;  %s2068_s20 = sshll.u32 %s631_s24, 4  ;;  %s3446_s20 = int_to_ptr.vmem [resolvable:$true] %s2068_s20 }
 0x57b   : > { %s2800_s1 = scalar_lea.vmem %s3446_s20, 128 }
 0x57c   : > { %p2801_p7 = scmp.ne.s32.totalorder %s3446_s20, %s2800_s1 }
 0x57e   : > { %p2802_p11 = pnand %p2801_p7, %p3549_p9 }
 0x580   : > { %2388 = vmatmul.mubr.msk.f32.vlgmr.msra.gmra.mrb[6].mxu0 %vm992_vm3, %v1173_v62  ;;  %p2803_p12 = pneg %p2802_p11 }
 0x581   : > { %2402 = vmatprep.mubr.msk.f32.mxu0 %vm2895_vm0, %v2896_v12  ;;  %2401 = vmatpush3.msra.mxu0 %v1710_v63 }
 0x582   : > { %2410 = vmatprep.subr.mxu0 %v2896_v12 }
 0x5f1   : > { %v1682_v0 = vpop.xlane.xlu0 %1681 }
 0x5f2   : > { %v1683_v1 = vmul.f32 0.125, %v1682_v0 }
 0x5f4   : > { %v1684_v2 = vadd.f32 0.00064, %v1683_v1 }
 0x5f5   : > { %v1706_v9 = vpop.permute.xlu0 %1705 }
 0x5f6   : > { %2583 = vrsqrt.f32 %v1684_v2 }
 0x600   : > { %v2584_v3 = vpop.eup %2583 }
 0x601   : > { %v1686_v5 = vmul.f32 %v2584_v3, %v1678_v40 }
 0x603   : > { %v1695_v7 = vmul.f32 %v2256_v4, %v1686_v5 }
 0x605   : > { %v1704_v8 = vadd.f32 %v2258_v6, %v1695_v7 }
 0x607   : > { %v1708_v10 = vmul.f32 %v1706_v9, %v1704_v8 }
 0x609   : > { %2403 = vmatmul.mubr.msk.f32.vlgmr.msra.gmra.mrb[6].mxu0 %vm992_vm3, %v1708_v10 }
 0x60a   : > { %2411 = vmatpush3.msra.mxu0 %v1867_v13  ;;  %2412 = vmatprep.mubr.msk.f32.mxu0 %vm2895_vm0, %v2896_v12 }
 0x60b   : > { %2415 = vmatprep.subr.mxu0 %v2896_v12 }
 0x60d   : > { %2413 = vmatmul.mubr.msk.f32.vlgmr.msra.gmra.mrb[8].mxu0 %vm992_vm3, %v1865_v14 }
 0x60e   : > { %2417 = vmatprep.mubr.msk.f32.mxu0 %vm2895_vm0, %v2896_v12  ;;  %2416 = vmatpush3.msra.mxu0 %v1978_v23 }
 0x6e0   : > { %v1938_v15 = vpop.f32.mrb[8].mxu0 }
 0x6e1   : > { %v2414_v16 = vpop.f32.mrb[9].mxu0  ;;  %v1942_v17 = vsel %vm992_vm3, %v1938_v15, 0.0 }
 0x6e2   : > { %1943 = vadd.xlane.f32.xlu1 %v1942_v17 }
 0x76f   : > { %v1944_v18 = vpop.xlane.xlu1 %1943 }
 0x770   : > { %v1945_v19 = vmul.f32 0.125, %v1944_v18 }
 0x772   : > { %v1946_v20 = vsub.f32 %v1938_v15, %v1945_v19 }
 0x774   : > { %v1947_v21 = vmul.f32 %v1946_v20, %v1946_v20 }
 0x776   : > { %v1948_v22 = vsel %vm992_vm3, %v1947_v21, 0.0 }
 0x777   : > { %1949 = vadd.xlane.f32.xlu0 %v1948_v22 }
 0x78d   : > { %1973 = vrot.lane.b32.xlu0 %v3378_v24, %s2899_s16  ;;  %s2269_s16 = sshll.u32 %s3007_s25, 7  ;;  %s2900_s25 = smov [#allocation16]  }
 0x78e   : > { %s3444_s19 = scalar_lea.hbm %s3548_s26, %s2269_s16  ;;  %s2804_s27 = sshll.u32 %s2900_s25, 4  ;;  %s2805_s27 = int_to_ptr.vmem [resolvable:$false] %s2804_s27 }
 0x78f   : > { %s2806_s16 = scalar_lea.vmem %s2805_s27, 256  ;;  %p2807_p4 = scmp.lt.s32.totalorder %s3446_s20, %s2805_s27 }
 0x790   : > { %p2808_p10 = scmp.lt.s32.totalorder %s2806_s16, %s2800_s1 }
 0x792   : > { %p2809_p6 = por %p2808_p10, %p2807_p4 }
 0x794   : > { %p2810_p2 = pnand %p2809_p6, %p2803_p12 }
 0x804   : > { %v1950_v12 = vpop.xlane.xlu0 %1949 }
 0x805   : > { %v1951_v25 = vmul.f32 0.125, %v1950_v12 }
 0x807   : > { %v1952_v26 = vadd.f32 0.00064, %v1951_v25 }
 0x808   : > { %v1974_v32 = vpop.permute.xlu0 %1973 }
 0x809   : > { %2585 = vrsqrt.f32 %v1952_v26 }
 0x813   : > { %v2586_v27 = vpop.eup %2585 }
 0x814   : > { %v1954_v29 = vmul.f32 %v2586_v27, %v1946_v20 }
 0x816   : > { %v1963_v24 = vmul.f32 %v2264_v28, %v1954_v29 }
 0x818   : > { %v1972_v31 = vadd.f32 %v2266_v30, %v1963_v24 }
 0x81a   : > { %v1976_v33 = vmul.f32 %v1974_v32, %v1972_v31 }
 0x81c   : > { %2418 = vmatmul.mubr.msk.f32.vlgmr.msra.gmra.mrb[6].mxu0 %vm992_vm3, %v1976_v33 }
 0x8ef   : > { %v2048_v34 = vpop.f32.mrb[6].mxu0 }
 0x8f0   : > { %2053 = vst.msk [vmem:[%s631_s24] sm:$0xff] %vm679_vm2, %v2048_v34  ;;  %v2419_v35 = vpop.f32.mrb[7].mxu0 }
 0x8f1   : > { %2813 = shalt.err (!%p2810_p2)
}
 0x8f2   : > { %s2814_s29 = scalar_lea.hbm %s3444_s19, 128  ;;  %s2818_s18 = scalar_lea.hbm %s3548_s26, 256 }
 0x8f3   : > { %p2815_p5 = scmp.ne.s32.totalorder %s3444_s19, %s2814_s29  ;;  %p2819_p1 = scmp.lt.u32.totalorder %s3444_s19, %s3548_s26 }
 0x8f4   : > { %p2820_p0 = scmp.lt.u32.totalorder %s2818_s18, %s2814_s29  ;;  %p2822_p7 = scmp.lt.u32.totalorder %s2814_s29, %s3444_s19 }
 0x8f5   : > { %p2816_p8 = pnand %p2815_p5, %p3549_p9 }
 0x8f6   : > { %p2821_p3 = por %p2820_p0, %p2819_p1 }
 0x8f7   : > { %p2817_p13 = pneg %p2816_p8 }
 0x8f8   : > { %p2823_p11 = por %p2822_p7, %p2821_p3 }
 0x8fa   : > { %p2824_p12 = pnand %p2823_p11, %p2817_p13 }
 0x8fc   : > { %2827 = shalt.err (!%p2824_p12)
}
 0x8fd   : > { %2480 = dma.vmem_to_hbm [thread:$0]  (%p3549_p9), %s3446_s20, 128, %s3444_s19, %s2055_s4  }
 0x8fe PF: > { %s2080_s1 = sand.u32 1, %s2870_s11   ;;  %p3550_p4 = scmp.ne.s32.totalorder %s3531_s30, 0 }
 0x8ff   : > { %p3551_p10 = scmp.ge.s32.totalorder %s2882_s22, 2  ;;  %s2081_s16 = scalar_lea.sflag [#allocation4], %s2080_s1 }
 0x901   : > { %p2509_p6 = pnand %p3551_p10, %p3550_p4 }
 0x903   : > { %2865 = dma.done.wait (!%p2509_p6), %s2081_s16, 128  }
 0x904   : > { %2867 = vsyncadd (!%p2509_p6), %s2081_s16, 4294967168  ;;  %p33_p2 = scmp.ge.s32.totalorder %s3180_s14, 4   ;;  %s3552_s11 = smov %s2874_s12 }
 0x905   : > { %s3553_s12 = smov %s2878_s21  ;;  %s3554_s21 = smov %s3192_s2 }
 0x906   : > { %s3555_s22 = smov %s3180_s14  ;;  %35 = sbr.rel (!%p33_p2) target bundleno = 18 (0x12), region = 170 }
 0x90d   :  { %2086 = vsyncpa [#allocation3], 1 }
 0x90e   :  { %2088 = vsyncpa [#allocation3 + $0x1], 1 }
 0x90f   :  { %2089 = vsyncpa [#allocation7], 1 }
 0x910   :  { %2090 = vsyncpa [#allocation10], 1 }
 0x911   :  { %2091 = vsyncpa [#allocation13], 1 }
 0x912   :  { %2092 = vsyncpa [#allocation4], 1 }
 0x913   :  { %2094 = vsyncpa [#allocation4 + $0x1], 1 }
 0x914   :  { %2095 = vsyncpa [#allocation5], 1 }
 0x915   :  { %2097 = vsyncpa [#allocation5 + $0x1], 1 }

</bundles_post_ra>
